<compile_context>
chip_gen: v6e
topology: v6e:2x2x1
jax: 0.10.0
libtpu: 0.0.40
codegen_flags: <defaults>
</compile_context>

<pallas_src>
import numpy as np
import jax
import jax.numpy as jnp
from jax.experimental import pallas as pl
from jax.experimental.pallas import tpu as pltpu


# ----------------------------- Pallas kernel ---------------------------------
def _make_subgraphnet_kernel(Gb, Lp, Cin, H):
    f32 = jnp.float32

    def kernel(x_ref, w1a_ref, w2t_ref, w2b_ref, b2_ref,
               w3t_ref, w3b_ref, b3_ref, out_ref):
        # x_ref:  (Gb*Lp, Cin+1)  -- last channel is the validity bit (0 for padding)
        # w1a:    (Cin+1, H)      -- [w1; b1] (bias folded via the ones-column)
        # w2t/w2b/w3t/w3b: (H, H) -- top/bottom halves of the (2H, H) weights
        # b2/b3:  (1, H)
        # out_ref:(Gb, 2H)
        x = x_ref[...]                                   # (Gb*Lp, Cin+1)
        valid = x[:, Cin:Cin + 1]                        # (Gb*Lp, 1)
        valid3 = valid.reshape(Gb, Lp, 1)                # layout-trivial (Lp mult of 8)

        # --- sublayer 1: padding rows (all-zero incl. validity bit) -> h1 == 0
        h1 = jnp.maximum(
            jnp.dot(x, w1a_ref[...], preferred_element_type=f32), 0.0)   # (Gb*Lp, H)
        m1 = jnp.max(h1.reshape(Gb, Lp, H), axis=1)                      # (Gb, H)

        def sublayer(h_prev, m_prev, wt_ref, wb_ref, b_ref):
            # [h_prev | rep(m_prev)] @ W + b == h_prev @ W_top + rep(m_prev @ W_bot + b)
            t = jnp.dot(m_prev, wb_ref[...],
                        preferred_element_type=f32) + b_ref[...]         # (Gb, H)
            u = jnp.dot(h_prev, wt_ref[...],
                        preferred_element_type=f32)                      # (Gb*Lp, H)
            z = u.reshape(Gb, Lp, H) + t.reshape(Gb, 1, H)               # group bcast
            h = jnp.maximum(z, 0.0) * valid3                             # zero pad rows
            m = jnp.max(h, axis=1)                                       # (Gb, H)
            return h.reshape(Gb * Lp, H), m

        h2, m2 = sublayer(h1, m1, w2t_ref, w2b_ref, b2_ref)
        _, m3 = sublayer(h2, m2, w3t_ref, w3b_ref, b3_ref)

        # out3 = [h3 | rep(m3)];  torch.max(out3, dim=0)[0] == [m3 | m3]
        out_ref[...] = jnp.concatenate([m3, m3], axis=1)                 # (Gb, 2H)

    return kernel


# ----------------------------- wrapper ---------------------------------------
def subgraphnet_pallas(x_flat, split_sizes, params, *, group_block=32):
    """x_flat: (N_total, C_in) f32, split_sizes: python ints -> (G, feat) f32."""
    w1, b1, w2, b2, w3, b3 = params
    C_in = x_flat.shape[1]
    H = w1.shape[1]
    feat = 2 * H

    G = len(split_sizes)
    Gb = group_block
    assert Gb % 8 == 0, "group_block must be a multiple of 8 (sublane tile)"
    G_pad = ((G + Gb - 1) // Gb) * Gb
    Lp = max(8, -(-max(split_sizes) // 8) * 8)    # padded rows/group, multiple of 8

    # Glue (host-side packing): ragged polylines -> (G_pad*Lp, C_in+1) with a
    # validity channel; padding rows are all-zero including the validity bit.
    x_np = np.zeros((G_pad, Lp, C_in + 1), np.float32)
    x_host = np.asarray(x_flat)
    cnt = 0
    for g, s in enumerate(split_sizes):
        x_np[g, :s, :C_in] = x_host[cnt:cnt + s]
        x_np[g, :s, C_in] = 1.0
        cnt += s
    x_aug = jnp.asarray(x_np.reshape(G_pad * Lp, C_in + 1))

    # Fold b1 into the augmented weight; split w2/w3 so no concat is needed in-kernel.
    w1a = jnp.concatenate([w1, b1], axis=0)        # (C_in+1, H)
    w2t, w2b = w2[:H], w2[H:]
    w3t, w3b = w3[:H], w3[H:]

    kernel = _make_subgraphnet_kernel(Gb, Lp, C_in, H)
    full = lambda g: (0, 0)                        # weights: fetched once, constant index

    out = pl.pallas_call(
        kernel,
        out_shape=jax.ShapeDtypeStruct((G_pad, feat), jnp.float32),
        grid_spec=pltpu.PrefetchScalarGridSpec(
            num_scalar_prefetch=0,
            grid=(G_pad // Gb,),
            in_specs=[
                pl.BlockSpec((Gb * Lp, C_in + 1), lambda g: (g, 0)),   # packed rows
                pl.BlockSpec(w1a.shape, full),
                pl.BlockSpec(w2t.shape, full),
                pl.BlockSpec(w2b.shape, full),
                pl.BlockSpec(b2.shape, full),
                pl.BlockSpec(w3t.shape, full),
                pl.BlockSpec(w3b.shape, full),
                pl.BlockSpec(b3.shape, full),
            ],
            out_specs=pl.BlockSpec((Gb, feat), lambda g: (g, 0)),
        ),
        compiler_params=pltpu.CompilerParams(
            dimension_semantics=("parallel",)),
    )(x_aug, w1a, w2t, w2b, b2, w3t, w3b, b3)
    return out[:G]


# ----------------------------- pure-JAX reference -----------------------------
def subgraphnet_ref(x_flat, split_sizes, params):
    w1, b1, w2, b2, w3, b3 = params

    def sublayer(inp, w, b):
        h = jnp.maximum(inp @ w + b, 0.0)
        m = jnp.max(h, axis=0)
        return jnp.concatenate([h, jnp.tile(m[None, :], (h.shape[0], 1))], axis=1)

    outs, cnt = [], 0
    for s in split_sizes:
        seg = x_flat[cnt:cnt + s]
        o1 = sublayer(seg, w1, b1)
        o2 = sublayer(o1, w2, b2)
        o3 = sublayer(o2, w3, b3)
        outs.append(jnp.max(o3, axis=0))
        cnt += s
    return jnp.stack(outs)


# ----------------------------------- main -------------------------------------
if __name__ == "__main__":
    # Module config: SubgraphNet(input_channels=4, feat_size=32)
    input_channels = 4
    feat_size = 32
    H = feat_size // 2

    key = jax.random.PRNGKey(0)
    k = jax.random.split(key, 8)

    # Linear params stored as (in, out) + bias (1, out).
    w1 = jax.random.normal(k[0], (input_channels, H), jnp.float32) * 0.3
    b1 = jax.random.normal(k[1], (1, H), jnp.float32) * 0.1
    w2 = jax.random.normal(k[2], (feat_size, H), jnp.float32) * 0.3
    b2 = jax.random.normal(k[3], (1, H), jnp.float32) * 0.1
    w3 = jax.random.normal(k[4], (feat_size, H), jnp.float32) * 0.3
    b3 = jax.random.normal(k[5], (1, H), jnp.float32) * 0.1
    params = (w1, b1, w2, b2, w3, b3)

    # 64 polylines with 1..8 vectors each; one grid step handles 32 groups
    # (Gb*Lp = 256 rows per matmul).
    G = 64
    split_sizes = [int(v) for v in np.asarray(
        jax.random.randint(k[6], (G,), 1, 9, dtype=jnp.int32))]
    n_total = sum(split_sizes)
    x_flat = jax.random.normal(k[7], (n_total, input_channels), jnp.float32)

    out = jax.block_until_ready(
        subgraphnet_pallas(x_flat, split_sizes, params, group_block=32))
    ref = jax.block_until_ready(subgraphnet_ref(x_flat, split_sizes, params))

    assert out.shape == (G, feat_size)
    assert np.allclose(np.asarray(out), np.asarray(ref), atol=1e-4, rtol=1e-4)

    print("KERNEL_OK")
</pallas_src>

<mosaic_0001>
module attributes {stable_mosaic.version = 11 : i64} {
  func.func @kernel(%arg0: i32, %arg1: memref<256x5xf32, #tpu.memory_space<vmem>>, %arg2: memref<5x16xf32, #tpu.memory_space<vmem>>, %arg3: memref<16x16xf32, #tpu.memory_space<vmem>>, %arg4: memref<16x16xf32, #tpu.memory_space<vmem>>, %arg5: memref<1x16xf32, #tpu.memory_space<vmem>>, %arg6: memref<16x16xf32, #tpu.memory_space<vmem>>, %arg7: memref<16x16xf32, #tpu.memory_space<vmem>>, %arg8: memref<1x16xf32, #tpu.memory_space<vmem>>, %arg9: memref<32x32xf32, #tpu.memory_space<vmem>>) attributes {dimension_semantics = [#tpu.dimension_semantics<parallel>], iteration_bounds = array<i64: 2>, scalar_prefetch = 0 : i64, scratch_operands = 0 : i64, tpu.core_type = #tpu.core_type<tc>, window_params = [{transform_indices = @transform_0, window_bounds = array<i64: 256, 5>}, {pipeline_mode = #tpu.pipeline_mode<synchronous>, transform_indices = @transform_1, window_bounds = array<i64: 5, 16>}, {pipeline_mode = #tpu.pipeline_mode<synchronous>, transform_indices = @transform_2, window_bounds = array<i64: 16, 16>}, {pipeline_mode = #tpu.pipeline_mode<synchronous>, transform_indices = @transform_3, window_bounds = array<i64: 16, 16>}, {pipeline_mode = #tpu.pipeline_mode<synchronous>, transform_indices = @transform_4, window_bounds = array<i64: 1, 16>}, {pipeline_mode = #tpu.pipeline_mode<synchronous>, transform_indices = @transform_5, window_bounds = array<i64: 16, 16>}, {pipeline_mode = #tpu.pipeline_mode<synchronous>, transform_indices = @transform_6, window_bounds = array<i64: 16, 16>}, {pipeline_mode = #tpu.pipeline_mode<synchronous>, transform_indices = @transform_7, window_bounds = array<i64: 1, 16>}, {transform_indices = @transform_8, window_bounds = array<i64: 32, 32>}]} {
    %c0 = arith.constant 0 : index
    %c0_0 = arith.constant 0 : index
    %0 = vector.load %arg1[%c0, %c0_0] : memref<256x5xf32, #tpu.memory_space<vmem>>, vector<256x5xf32>
    %1 = vector.extract_strided_slice %0 {offsets = [0, 4], sizes = [256, 1], strides = [1, 1]} : vector<256x5xf32> to vector<256x1xf32>
    %2 = vector.shape_cast %1 : vector<256x1xf32> to vector<32x8x1xf32>
    %c0_1 = arith.constant 0 : index
    %c0_2 = arith.constant 0 : index
    %3 = vector.load %arg2[%c0_1, %c0_2] : memref<5x16xf32, #tpu.memory_space<vmem>>, vector<5x16xf32>
    %cst = arith.constant dense<0.000000e+00> : vector<256x16xf32>
    %4 = tpu.matmul %0, %3, %cst {dimension_numbers = #tpu.dot_dimension_numbers<[1], [0], [0], [1], [0, 0, 1, 1], [], []>} : vector<256x5xf32>, vector<5x16xf32>, vector<256x16xf32> -> vector<256x16xf32>
    %cst_3 = arith.constant 0.000000e+00 : f32
    %5 = vector.broadcast %cst_3 : f32 to vector<256x16xf32>
    %6 = arith.maximumf %4, %5 : vector<256x16xf32>
    %7 = vector.shape_cast %6 : vector<256x16xf32> to vector<32x8x16xf32>
    %cst_4 = arith.constant dense<0xFF800000> : vector<32x16xf32>
    %8 = vector.multi_reduction <maximumf>, %7, %cst_4 [1] : vector<32x8x16xf32> to vector<32x16xf32>
    %c0_5 = arith.constant 0 : index
    %c0_6 = arith.constant 0 : index
    %9 = vector.load %arg4[%c0_5, %c0_6] : memref<16x16xf32, #tpu.memory_space<vmem>>, vector<16x16xf32>
    %cst_7 = arith.constant dense<0.000000e+00> : vector<32x16xf32>
    %10 = tpu.matmul %8, %9, %cst_7 {dimension_numbers = #tpu.dot_dimension_numbers<[1], [0], [0], [1], [0, 0, 1, 1], [], []>} : vector<32x16xf32>, vector<16x16xf32>, vector<32x16xf32> -> vector<32x16xf32>
    %c0_8 = arith.constant 0 : index
    %c0_9 = arith.constant 0 : index
    %11 = vector.load %arg5[%c0_8, %c0_9] : memref<1x16xf32, #tpu.memory_space<vmem>>, vector<1x16xf32>
    %12 = vector.broadcast %11 : vector<1x16xf32> to vector<32x16xf32>
    %13 = arith.addf %10, %12 : vector<32x16xf32>
    %c0_10 = arith.constant 0 : index
    %c0_11 = arith.constant 0 : index
    %14 = vector.load %arg3[%c0_10, %c0_11] : memref<16x16xf32, #tpu.memory_space<vmem>>, vector<16x16xf32>
    %cst_12 = arith.constant dense<0.000000e+00> : vector<256x16xf32>
    %15 = tpu.matmul %6, %14, %cst_12 {dimension_numbers = #tpu.dot_dimension_numbers<[1], [0], [0], [1], [0, 0, 1, 1], [], []>} : vector<256x16xf32>, vector<16x16xf32>, vector<256x16xf32> -> vector<256x16xf32>
    %16 = vector.shape_cast %15 : vector<256x16xf32> to vector<32x8x16xf32>
    %17 = vector.shape_cast %13 : vector<32x16xf32> to vector<32x1x16xf32>
    %18 = vector.broadcast %17 : vector<32x1x16xf32> to vector<32x8x16xf32>
    %19 = arith.addf %16, %18 : vector<32x8x16xf32>
    %cst_13 = arith.constant 0.000000e+00 : f32
    %20 = vector.broadcast %cst_13 : f32 to vector<32x8x16xf32>
    %21 = arith.maximumf %19, %20 : vector<32x8x16xf32>
    %22 = vector.broadcast %2 : vector<32x8x1xf32> to vector<32x8x16xf32>
    %23 = arith.mulf %21, %22 : vector<32x8x16xf32>
    %cst_14 = arith.constant dense<0xFF800000> : vector<32x16xf32>
    %24 = vector.multi_reduction <maximumf>, %23, %cst_14 [1] : vector<32x8x16xf32> to vector<32x16xf32>
    %25 = vector.shape_cast %23 : vector<32x8x16xf32> to vector<256x16xf32>
    %c0_15 = arith.constant 0 : index
    %c0_16 = arith.constant 0 : index
    %26 = vector.load %arg7[%c0_15, %c0_16] : memref<16x16xf32, #tpu.memory_space<vmem>>, vector<16x16xf32>
    %cst_17 = arith.constant dense<0.000000e+00> : vector<32x16xf32>
    %27 = tpu.matmul %24, %26, %cst_17 {dimension_numbers = #tpu.dot_dimension_numbers<[1], [0], [0], [1], [0, 0, 1, 1], [], []>} : vector<32x16xf32>, vector<16x16xf32>, vector<32x16xf32> -> vector<32x16xf32>
    %c0_18 = arith.constant 0 : index
    %c0_19 = arith.constant 0 : index
    %28 = vector.load %arg8[%c0_18, %c0_19] : memref<1x16xf32, #tpu.memory_space<vmem>>, vector<1x16xf32>
    %29 = vector.broadcast %28 : vector<1x16xf32> to vector<32x16xf32>
    %30 = arith.addf %27, %29 : vector<32x16xf32>
    %c0_20 = arith.constant 0 : index
    %c0_21 = arith.constant 0 : index
    %31 = vector.load %arg6[%c0_20, %c0_21] : memref<16x16xf32, #tpu.memory_space<vmem>>, vector<16x16xf32>
    %cst_22 = arith.constant dense<0.000000e+00> : vector<256x16xf32>
    %32 = tpu.matmul %25, %31, %cst_22 {dimension_numbers = #tpu.dot_dimension_numbers<[1], [0], [0], [1], [0, 0, 1, 1], [], []>} : vector<256x16xf32>, vector<16x16xf32>, vector<256x16xf32> -> vector<256x16xf32>
    %33 = vector.shape_cast %32 : vector<256x16xf32> to vector<32x8x16xf32>
    %34 = vector.shape_cast %30 : vector<32x16xf32> to vector<32x1x16xf32>
    %35 = vector.broadcast %34 : vector<32x1x16xf32> to vector<32x8x16xf32>
    %36 = arith.addf %33, %35 : vector<32x8x16xf32>
    %cst_23 = arith.constant 0.000000e+00 : f32
    %37 = vector.broadcast %cst_23 : f32 to vector<32x8x16xf32>
    %38 = arith.maximumf %36, %37 : vector<32x8x16xf32>
    %39 = vector.broadcast %2 : vector<32x8x1xf32> to vector<32x8x16xf32>
    %40 = arith.mulf %38, %39 : vector<32x8x16xf32>
    %cst_24 = arith.constant dense<0xFF800000> : vector<32x16xf32>
    %41 = vector.multi_reduction <maximumf>, %40, %cst_24 [1] : vector<32x8x16xf32> to vector<32x16xf32>
    %42 = tpu.concatenate %41, %41 in 1 : vector<32x16xf32>, vector<32x16xf32> -> vector<32x32xf32>
    %c0_25 = arith.constant 0 : index
    %c0_26 = arith.constant 0 : index
    %43 = vector.load %arg9[%c0_25, %c0_26] : memref<32x32xf32, #tpu.memory_space<vmem>>, vector<32x32xf32>
    tpu.vector_store %arg9[%c0_25, %c0_26], %42 {strides = array<i32>} : memref<32x32xf32, #tpu.memory_space<vmem>>, vector<32x32xf32>,
    return
  }
  func.func @transform_0(%arg0: i32) -> (i32, i32) {
    %c0_i32 = arith.constant 0 : i32
    %c0_i32_0 = arith.constant 0 : i32
    return %arg0, %c0_i32 : i32, i32
  }
  func.func @transform_1(%arg0: i32) -> (i32, i32) {
    %c0_i32 = arith.constant 0 : i32
    %c0_i32_0 = arith.constant 0 : i32
    %c0_i32_1 = arith.constant 0 : i32
    return %c0_i32, %c0_i32_0 : i32, i32
  }
  func.func @transform_2(%arg0: i32) -> (i32, i32) {
    %c0_i32 = arith.constant 0 : i32
    %c0_i32_0 = arith.constant 0 : i32
    %c0_i32_1 = arith.constant 0 : i32
    return %c0_i32, %c0_i32_0 : i32, i32
  }
  func.func @transform_3(%arg0: i32) -> (i32, i32) {
    %c0_i32 = arith.constant 0 : i32
    %c0_i32_0 = arith.constant 0 : i32
    %c0_i32_1 = arith.constant 0 : i32
    return %c0_i32, %c0_i32_0 : i32, i32
  }
  func.func @transform_4(%arg0: i32) -> (i32, i32) {
    %c0_i32 = arith.constant 0 : i32
    %c0_i32_0 = arith.constant 0 : i32
    %c0_i32_1 = arith.constant 0 : i32
    return %c0_i32, %c0_i32_0 : i32, i32
  }
  func.func @transform_5(%arg0: i32) -> (i32, i32) {
    %c0_i32 = arith.constant 0 : i32
    %c0_i32_0 = arith.constant 0 : i32
    %c0_i32_1 = arith.constant 0 : i32
    return %c0_i32, %c0_i32_0 : i32, i32
  }
  func.func @transform_6(%arg0: i32) -> (i32, i32) {
    %c0_i32 = arith.constant 0 : i32
    %c0_i32_0 = arith.constant 0 : i32
    %c0_i32_1 = arith.constant 0 : i32
    return %c0_i32, %c0_i32_0 : i32, i32
  }
  func.func @transform_7(%arg0: i32) -> (i32, i32) {
    %c0_i32 = arith.constant 0 : i32
    %c0_i32_0 = arith.constant 0 : i32
    %c0_i32_1 = arith.constant 0 : i32
    return %c0_i32, %c0_i32_0 : i32, i32
  }
  func.func @transform_8(%arg0: i32) -> (i32, i32) {
    %c0_i32 = arith.constant 0 : i32
    %c0_i32_0 = arith.constant 0 : i32
    return %arg0, %c0_i32 : i32, i32
  }
}

</mosaic_0001>

<bundles_post_ra>
// kernel: tpu_custom_call.1
= control target key start
LH: loop header
LB: loop body
LE: loop exit
PB: predicated region body
PF: predicated region fallthrough
CT: control target
= control target key end

     0   :  { %s4007_s27 = smov 0   ;;  %s5446_s0 = inlined_call_operand.vmem [shape: f32[512,5], index: 0, kind: input, shape index: {}]   ;;  %s5447_s1 = inlined_call_operand.vmem [shape: f32[5,16], index: 1, kind: input, shape index: {}]   ;;  %s5448_s2 = inlined_call_operand.vmem [shape: f32[16,16], index: 2, kind: input, shape index: {}]   ;;  %s5449_s3 = inlined_call_operand.vmem [shape: f32[16,16], index: 3, kind: input, shape index: {}]   ;;  %s5450_s4 = inlined_call_operand.vmem [shape: f32[1,16], index: 4, kind: input, shape index: {}]   ;;  %s5451_s5 = inlined_call_operand.vmem [shape: f32[16,16], index: 5, kind: input, shape index: {}]   ;;  %s5452_s6 = inlined_call_operand.vmem [shape: f32[16,16], index: 6, kind: input, shape index: {}]   ;;  %s5453_s7 = inlined_call_operand.vmem [shape: f32[1,16], index: 7, kind: input, shape index: {}]   ;;  %s5454_s8 = inlined_call_operand.vmem [shape: f32[64,32], index: 8, kind: output, shape index: {}]  }
   0x1 LB: > { %s3531_s28 = sadd.s32 4294967295, %s3957_s27   ;;  %p3535_p0 = scmp.ge.s32.totalorder %s3957_s27, 1  ;;  %s3957_s27 = sphi %s4007_s27, %s18_s27  }
   0x2   : > { %p263_p1 = scmp.lt.s32.totalorder %s3957_s27, 3 }
   0x4   : > { %p264_p2 = pnand %p3535_p0, %p263_p1 }
   0x6   : > { %267 = sbr.rel (%p264_p2) target bundleno = 1017 (0x3f9), region = 52 }
   0xb   : > { %v341_v0 = vld [vmem:[%s5447_s1] sm:$0x1f]  ;;  %vm439_vm0 = vcmask 1044480   ;;  %s3536_s9 = sshll.u32 %s3531_s28, 5  ;;  %vm342_vm1 = vcmask 39936   ;;  %v926_v33 = vld [vmem:[%s5449_s3 + $0x8] sm:$0xff] }
   0xc   : > { %3762 = vmatprep.subr.msk.mxu0 %vm439_vm0, %v341_v0  ;;  %3936 = vmatprep.subr.msk.mxu1 %vm439_vm0, %v341_v0  ;;  %p298_p3 = scmp.lt.s32.totalorder %s3536_s9, 63  ;;  %v925_v34 = vld [vmem:[%s5449_s3] sm:$0xff]  ;;  %v4176_v35 = vld [vmem:[%s5448_s2 + $0x8] sm:$0xff]  ;;  %v3959_v36 = vmov 4   ;;  %vm700_vm2 = vcmask 130048   ;;  %vm966_vm3 = vcmask 1041409  }
   0xd   : > { %3763 = vmatpush3.msk.msra.mxu0 %vm439_vm0, %v341_v0  ;;  %3937 = vmatpush3.msk.msra.mxu1 %vm439_vm0, %v341_v0  ;;  %vm968_vm4 = vcmask 1042434   ;;  %vm970_vm5 = vcmask 1043459   ;;  %vm972_vm6 = vcmask 1044484   ;;  %vm974_vm7 = vcmask 1045509   ;;  %s3961_s14 = smov 16   ;;  %s3538_s15 = sshll.u32 %s3531_s28, 2 }
   0xe   : > { %s5671_s9 = smov (!%p298_p3, %s3536_s9), 63  ;;  %3812 = vmatprep.subr.mxu1 %v926_v33  ;;  %3949 = vset.pattern.permute.xlu0 %v3959_v36  ;;  %vm976_vm8 = vcmask 1046534   ;;  %vm978_vm9 = vcmask 1047559   ;;  %p304_p4 = scmp.lt.s32.totalorder %s3538_s15, 7  ;;  %vm3470_vm10 = vcmask 261120  }
   0xf   : > { %s3537_s10 = sshll.u32 %s5671_s9, 3  ;;  %3950 = vset.pattern.permute.xlu1 %v3959_v36 }
  0x10   : > { %s4023_s13 = scalar_lea.vmem %s5446_s0, %s3537_s10  ;;  %s5673_s15 = smov (!%p304_p4, %s3538_s15), 7 }
  0x11   : > { %v4026_v1 = vld [vmem:[%s4023_s13] sm:$0xff]  ;;  %v4032_v3 = vld [vmem:[%s4023_s13 + $0x8] sm:$0xff]  ;;  %v4042_v5 = vld [vmem:[%s4023_s13 + $0x10] sm:$0xff]  ;;  %s3539_s16 = sshll.u32 %s5673_s15, 3 }
  0x12   : > { %v4029_v2 = vld [vmem:[%s4023_s13 + $0x80] sm:$0xff]  ;;  %3764 = vmatprep.mubr.msk.f32.mxu0 %vm342_vm1, %v4026_v1  ;;  %v4039_v4 = vld [vmem:[%s4023_s13 + $0x88] sm:$0xff]  ;;  %v4045_v6 = vld [vmem:[%s4023_s13 + $0x90] sm:$0xff]  ;;  %1842 = vperm.xlu0 %3949, %v4026_v1   ;;  %s307_s19 = scalar_lea.vmem %s5454_s8, %s3539_s16 }
  0x13   : > { %3788 = vmatprep.mubr.msk.f32.mxu1 %vm342_vm1, %v4029_v2  ;;  %3765 = vmatmul.mubr.msk.f32.vlgmr.msra.gmra.mxu0 %vm342_vm1, %v4032_v3  ;;  %v4056_v7 = vld [vmem:[%s4023_s13 + $0x18] sm:$0xff]  ;;  %v4062_v9 = vld [vmem:[%s4023_s13 + $0x20] sm:$0xff]  ;;  %v4076_v11 = vld [vmem:[%s4023_s13 + $0x28] sm:$0xff] }
  0x14   : > { %3789 = vmatmul.mubr.msk.f32.vlgmr.msra.gmra.mxu1 %vm342_vm1, %v4039_v4  ;;  %3767 = vmatprep.mubr.msk.f32.mxu0 %vm342_vm1, %v4042_v5  ;;  %v4059_v8 = vld [vmem:[%s4023_s13 + $0x98] sm:$0xff]  ;;  %v4065_v10 = vld [vmem:[%s4023_s13 + $0xa0] sm:$0xff]  ;;  %v4079_v12 = vld [vmem:[%s4023_s13 + $0xa8] sm:$0xff] }
  0x15   : > { %3791 = vmatprep.mubr.msk.f32.mxu1 %vm342_vm1, %v4045_v6  ;;  %v4082_v13 = vld [vmem:[%s4023_s13 + $0x30] sm:$0xff]  ;;  %v4096_v15 = vld [vmem:[%s4023_s13 + $0x38] sm:$0xff]  ;;  %v317_v17 = vld [vmem:[%s4023_s13 + $0x40] sm:$0xff]  ;;  %3813 = vmatpush3.msra.mxu1 %v926_v33 }
  0x16   : > { %v4085_v14 = vld [vmem:[%s4023_s13 + $0xb0] sm:$0xff]  ;;  %v4099_v16 = vld [vmem:[%s4023_s13 + $0xb8] sm:$0xff]  ;;  %v4103_v18 = vld [vmem:[%s4023_s13 + $0xc0] sm:$0xff]  ;;  %3814 = vmatprep.subr.mxu1 %v925_v34  ;;  %1850 = vperm.xlu1 %3950, %v4042_v5  }
  0x17   : > { %3768 = vmatmul.mubr.msk.f32.gmra.mxu0 %vm342_vm1, %v4056_v7  ;;  %v318_v19 = vld [vmem:[%s4023_s13 + $0x48] sm:$0xff]  ;;  %v319_v21 = vld [vmem:[%s4023_s13 + $0x50] sm:$0xff]  ;;  %v320_v23 = vld [vmem:[%s4023_s13 + $0x58] sm:$0xff]  ;;  %3815 = vmatpush3.msra.mxu1 %v925_v34 }
  0x18   : > { %3792 = vmatmul.mubr.msk.f32.gmra.mxu1 %vm342_vm1, %v4059_v8  ;;  %3770 = vmatprep.mubr.msk.f32.mxu0 %vm342_vm1, %v4062_v9  ;;  %v4114_v20 = vld [vmem:[%s4023_s13 + $0xc8] sm:$0xff]  ;;  %v4118_v22 = vld [vmem:[%s4023_s13 + $0xd0] sm:$0xff]  ;;  %v4128_v24 = vld [vmem:[%s4023_s13 + $0xd8] sm:$0xff] }
  0x19   : > { %3794 = vmatprep.mubr.msk.f32.mxu1 %vm342_vm1, %v4065_v10  ;;  %v321_v25 = vld [vmem:[%s4023_s13 + $0x60] sm:$0xff]  ;;  %v322_v27 = vld [vmem:[%s4023_s13 + $0x68] sm:$0xff]  ;;  %v4145_v29 = vld [vmem:[%s4023_s13 + $0x70] sm:$0xff]  ;;  %3822 = vmatprep.subr.mxu1 %v4176_v35 }
  0x1a   : > { %v4132_v26 = vld [vmem:[%s4023_s13 + $0xe0] sm:$0xff]  ;;  %v4142_v28 = vld [vmem:[%s4023_s13 + $0xe8] sm:$0xff]  ;;  %v4148_v30 = vld [vmem:[%s4023_s13 + $0xf0] sm:$0xff]  ;;  %1846 = vperm.xlu0 %3949, %v4032_v3   ;;  %1874 = vperm.xlu1 %3950, %v317_v17  }
  0x1b   : > { %3771 = vmatmul.mubr.msk.f32.gmra.mxu0 %vm342_vm1, %v4076_v11  ;;  %v4158_v31 = vld [vmem:[%s4023_s13 + $0x78] sm:$0xff] }
  0x1c   : > { %3795 = vmatmul.mubr.msk.f32.gmra.mxu1 %vm342_vm1, %v4079_v12  ;;  %3773 = vmatprep.mubr.msk.f32.mxu0 %vm342_vm1, %v4082_v13  ;;  %v4161_v32 = vld [vmem:[%s4023_s13 + $0xf8] sm:$0xff] }
  0x1d   : > { %3797 = vmatprep.mubr.msk.f32.mxu1 %vm342_vm1, %v4085_v14 }
  0x1e   : > { %1878 = vperm.xlu0 %3949, %v318_v19   ;;  %1854 = vperm.xlu1 %3950, %v4056_v7  }
  0x1f   : > { %3774 = vmatmul.mubr.msk.f32.gmra.mxu0 %vm342_vm1, %v4096_v15 }
  0x20   : > { %3798 = vmatmul.mubr.msk.f32.gmra.mxu1 %vm342_vm1, %v4099_v16  ;;  %3776 = vmatprep.mubr.msk.f32.mxu0 %vm342_vm1, %v317_v17 }
  0x21   : > { %3800 = vmatprep.mubr.msk.f32.mxu1 %vm342_vm1, %v4103_v18 }
  0x22   : > { %1882 = vperm.xlu0 %3949, %v319_v21   ;;  %1858 = vperm.xlu1 %3950, %v4062_v9  }
  0x23   : > { %3777 = vmatmul.mubr.msk.f32.gmra.mxu0 %vm342_vm1, %v318_v19 }
  0x24   : > { %3801 = vmatmul.mubr.msk.f32.gmra.mxu1 %vm342_vm1, %v4114_v20  ;;  %3779 = vmatprep.mubr.msk.f32.mxu0 %vm342_vm1, %v319_v21 }
  0x25   : > { %3803 = vmatprep.mubr.msk.f32.mxu1 %vm342_vm1, %v4118_v22 }
  0x26   : > { %1886 = vperm.xlu0 %3949, %v320_v23   ;;  %1862 = vperm.xlu1 %3950, %v4076_v11  }
  0x27   : > { %3780 = vmatmul.mubr.msk.f32.gmra.mxu0 %vm342_vm1, %v320_v23 }
  0x28   : > { %3804 = vmatmul.mubr.msk.f32.gmra.mxu1 %vm342_vm1, %v4128_v24  ;;  %3782 = vmatprep.mubr.msk.f32.mxu0 %vm342_vm1, %v321_v25 }
  0x29   : > { %3806 = vmatprep.mubr.msk.f32.mxu1 %vm342_vm1, %v4132_v26 }
  0x2a   : > { %1890 = vperm.xlu0 %3949, %v321_v25   ;;  %1906 = vperm.xlu1 %3950, %v4029_v2  }
  0x2b   : > { %3783 = vmatmul.mubr.msk.f32.gmra.mxu0 %vm342_vm1, %v322_v27 }
  0x2c   : > { %3807 = vmatmul.mubr.msk.f32.gmra.mxu1 %vm342_vm1, %v4142_v28  ;;  %3785 = vmatprep.mubr.msk.f32.mxu0 %vm342_vm1, %v4145_v29 }
  0x2d   : > { %3809 = vmatprep.mubr.msk.f32.mxu1 %vm342_vm1, %v4148_v30 }
  0x2e   : > { %1910 = vperm.xlu0 %3949, %v4039_v4   ;;  %1866 = vperm.xlu1 %3950, %v4082_v13  }
  0x2f   : > { %3786 = vmatmul.mubr.msk.f32.gmra.mxu0 %vm342_vm1, %v4158_v31 }
  0x30   : > { %3810 = vmatmul.mubr.msk.f32.gmra.mxu1 %vm342_vm1, %v4161_v32 }
  0x32   : > { %1894 = vperm.xlu0 %3949, %v322_v27   ;;  %1914 = vperm.xlu1 %3950, %v4045_v6  }
  0x36   : > { %1938 = vperm.xlu0 %3949, %v4103_v18   ;;  %1942 = vperm.xlu1 %3950, %v4114_v20  }
  0x3a   : > { %1870 = vperm.xlu0 %3949, %v4096_v15   ;;  %1898 = vperm.xlu1 %3950, %v4145_v29  }
  0x3e   : > { %1918 = vperm.xlu0 %3949, %v4059_v8   ;;  %1946 = vperm.xlu1 %3950, %v4118_v22  }
  0x42   : > { %1902 = vperm.xlu0 %3949, %v4158_v31   ;;  %1922 = vperm.xlu1 %3950, %v4065_v10  }
  0x46   : > { %1950 = vperm.xlu0 %3949, %v4128_v24   ;;  %1926 = vperm.xlu1 %3950, %v4079_v12  }
  0x4a   : > { %1954 = vperm.xlu0 %3949, %v4132_v26   ;;  %1930 = vperm.xlu1 %3950, %v4085_v14  }
  0x4e   : > { %1958 = vperm.xlu0 %3949, %v4142_v28   ;;  %1934 = vperm.xlu1 %3950, %v4099_v16  }
  0x52   : > { %1962 = vperm.xlu0 %3949, %v4148_v30   ;;  %1966 = vperm.xlu1 %3950, %v4161_v32  }
  0xd3   : > { %v4188_v37 = vpop.f32.mrf.mxu0 }
  0xd4   : > { %v4190_v38 = vpop.f32.mrf.mxu1  ;;  %v5473_v39 = vmax.f32 %v4188_v37, 0.0 }
  0xd5   : > { %5534 = vst [vmem:[#allocation2_spill] sm:$0xff] %v4190_v38  ;;  %v5460_v40 = vmax.f32 %v4190_v38, 0.0  ;;  %v4195_v41 = vpop.f32.mrf.mxu0 }
  0xd6   : > { %v4197_v42 = vpop.f32.mrf.mxu1  ;;  %v708_v43 = vsel %vm700_vm2, %v5473_v39, -inf  ;;  %v5474_v45 = vmax.f32 %v4195_v41, 0.0 }
  0xd7   : > { %5535 = vst [vmem:[#allocation3_spill] sm:$0xff] %v4197_v42  ;;  %v820_v44 = vsel %vm700_vm2, %v5460_v40, -inf  ;;  %v5461_v46 = vmax.f32 %v4197_v42, 0.0  ;;  %v709_v47 = vrot.slane %v708_v43, 4  ;;  %v4207_v49 = vpop.f32.mrf.mxu0 }
  0xd8   : > { %v821_v48 = vrot.slane %v820_v44, 4  ;;  %v4209_v50 = vpop.f32.mrf.mxu1  ;;  %v701_v51 = vsel %vm700_vm2, %v5474_v45, -inf  ;;  %v5471_v53 = vmax.f32 %v4207_v49, 0.0 }
  0xd9   : > { %5536 = vst [vmem:[#allocation4_spill] sm:$0xff] %v4209_v50  ;;  %v813_v52 = vsel %vm700_vm2, %v5461_v46, -inf  ;;  %v5458_v54 = vmax.f32 %v4209_v50, 0.0  ;;  %v710_v55 = vmax.f32 %v708_v43, %v709_v47  ;;  %v702_v57 = vrot.slane %v701_v51, 4  ;;  %v4221_v59 = vpop.f32.mrf.mxu0 }
  0xda   : > { %v822_v56 = vmax.f32 %v820_v44, %v821_v48  ;;  %v814_v58 = vrot.slane %v813_v52, 4  ;;  %v4223_v60 = vpop.f32.mrf.mxu1  ;;  %v722_v61 = vsel %vm700_vm2, %v5471_v53, -inf  ;;  %v5472_v63 = vmax.f32 %v4221_v59, 0.0 }
  0xdb   : > { %5537 = vst [vmem:[#allocation5_spill] sm:$0xff] %v4223_v60  ;;  %v834_v62 = vsel %vm700_vm2, %v5458_v54, -inf  ;;  %v5459_v0 = vmax.f32 %v4223_v60, 0.0  ;;  %v711_v1 = vrot.slane %v710_v55, 2  ;;  %v703_v3 = vmax.f32 %v701_v51, %v702_v57  ;;  %v4241_v18 = vpop.f32.mrf.mxu0 }
  0xdc   : > { %v823_v2 = vrot.slane %v822_v56, 2  ;;  %v815_v4 = vmax.f32 %v813_v52, %v814_v58  ;;  %v723_v5 = vrot.slane %v722_v61, 4  ;;  %v835_v6 = vrot.slane %v834_v62, 4  ;;  %v4243_v19 = vpop.f32.mrf.mxu1 }
  0xdd   : > { %v715_v7 = vsel %vm700_vm2, %v5472_v63, -inf  ;;  %v827_v9 = vsel %vm700_vm2, %v5459_v0, -inf  ;;  %v712_v11 = vmax.f32 %v710_v55, %v711_v1  ;;  %v704_v17 = vrot.slane %v703_v3, 2  ;;  %5538 = vst [vmem:[#allocation6_spill] sm:$0xff] %v4243_v19  ;;  %v4247_v36 = vpop.f32.mrf.mxu0 }
  0xde   : > { %v824_v13 = vmax.f32 %v822_v56, %v823_v2  ;;  %v816_v15 = vrot.slane %v815_v4, 2  ;;  %v724_v20 = vmax.f32 %v722_v61, %v723_v5  ;;  %v716_v21 = vrot.slane %v715_v7, 4  ;;  %v4249_v43 = vpop.f32.mrf.mxu1 }
  0xdf   : > { %v828_v23 = vrot.slane %v827_v9, 4  ;;  %v836_v25 = vmax.f32 %v834_v62, %v835_v6  ;;  %v713_v33 = vrot.slane %v712_v11, 1  ;;  %5539 = vst [vmem:[#allocation7_spill] sm:$0xff] %v4249_v43  ;;  %v705_v44 = vmax.f32 %v703_v3, %v704_v17  ;;  %v4261_v62 = vpop.f32.mrf.mxu0 }
  0xe0   : > { %v717_v27 = vmax.f32 %v715_v7, %v716_v21  ;;  %v825_v34 = vrot.slane %v824_v13, 1  ;;  %v817_v47 = vmax.f32 %v815_v4, %v816_v15  ;;  %v725_v48 = vrot.slane %v724_v20, 2  ;;  %v4263_v1 = vpop.f32.mrf.mxu1 }
  0xe1   : > { %v829_v29 = vmax.f32 %v827_v9, %v828_v23  ;;  %v5469_v52 = vmax.f32 %v4241_v18, 0.0  ;;  %v5455_v55 = vmax.f32 %v4243_v19, 0.0  ;;  %v837_v8 = vrot.slane %v836_v25, 2  ;;  %5540 = vst [vmem:[#allocation8_spill] sm:$0xff] %v4263_v1  ;;  %v4277_v24 = vpop.f32.mrf.mxu0 }
  0xe2   : > { %v718_v51 = vrot.slane %v717_v27, 2  ;;  %v714_v56 = vmax.f32 %v712_v11, %v713_v33  ;;  %v826_v57 = vmax.f32 %v824_v13, %v825_v34  ;;  %v706_v31 = vrot.slane %v705_v44, 1  ;;  %v4279_v12 = vpop.f32.mrf.mxu1 }
  0xe3   : > { %v830_v22 = vrot.slane %v829_v29, 2  ;;  %v736_v58 = vsel %vm700_vm2, %v5469_v52, -inf  ;;  %v848_v61 = vsel %vm700_vm2, %v5455_v55, -inf  ;;  %v818_v2 = vrot.slane %v817_v47, 1  ;;  %5541 = vst [vmem:[#allocation9_spill] sm:$0xff] %v4279_v12 }
  0xe4   : > { %v726_v10 = vmax.f32 %v724_v20, %v725_v48  ;;  %v719_v3 = vmax.f32 %v717_v27, %v718_v51  ;;  %v737_v4 = vrot.slane %v736_v58, 4  ;;  %v849_v5 = vrot.slane %v848_v61, 4  ;;  %v4293_v55 = vpop.f32.mrf.mxu1 }
  0xe5   : > { %v5470_v6 = vmax.f32 %v4247_v36, 0.0  ;;  %v5456_v7 = vmax.f32 %v4249_v43, 0.0  ;;  %v838_v9 = vmax.f32 %v836_v25, %v837_v8  ;;  %v831_v11 = vmax.f32 %v829_v29, %v830_v22  ;;  %5542 = vst [vmem:[#allocation10_spill] sm:$0xff] %v4293_v55 }
  0xe6   : > { %v5462_v13 = vmax.f32 %v4261_v62, 0.0  ;;  %v5457_v17 = vmax.f32 %v4263_v1, 0.0  ;;  %v738_v15 = vmax.f32 %v736_v58, %v737_v4  ;;  %v850_v20 = vmax.f32 %v848_v61, %v849_v5  ;;  %v4291_v5 = vpop.f32.mrf.mxu0  ;;  %v4309_v46 = vpop.f32.mrf.mxu1 }
  0xe7   : > { %v729_v21 = vsel %vm700_vm2, %v5470_v6, -inf  ;;  %v841_v23 = vsel %vm700_vm2, %v5456_v7, -inf  ;;  %v707_v25 = vmax.f32 %v705_v44, %v706_v31  ;;  %v819_v27 = vmax.f32 %v817_v47, %v818_v2  ;;  %5543 = vst [vmem:[#allocation11_spill] sm:$0xff] %v4309_v46 }
  0xe8   : > { %v730_v29 = vrot.slane %v729_v21, 4  ;;  %v842_v33 = vrot.slane %v841_v23, 4  ;;  %v720_v34 = vrot.slane %v719_v3, 1  ;;  %v739_v48 = vrot.slane %v738_v15, 2  ;;  %v4307_v40 = vpop.f32.mrf.mxu0 }
  0xe9   : > { %v750_v51 = vsel %vm700_vm2, %v5462_v13, -inf  ;;  %v862_v8 = vsel %vm700_vm2, %v5457_v17, -inf  ;;  %v832_v22 = vrot.slane %v831_v11, 1  ;;  %v851_v58 = vrot.slane %v850_v20, 2 }
  0xea   : > { %v731_v44 = vmax.f32 %v729_v21, %v730_v29  ;;  %v751_v47 = vrot.slane %v750_v51, 4  ;;  %v843_v61 = vmax.f32 %v841_v23, %v842_v33  ;;  %v863_v31 = vrot.slane %v862_v8, 4  ;;  %v4334_v32 = vpop.f32.mrf.mxu0 }
  0xeb   : > { %v5464_v2 = vmax.f32 %v4277_v24, 0.0  ;;  %v5463_v4 = vmax.f32 %v4279_v12, 0.0  ;;  %v727_v7 = vrot.slane %v726_v10, 1  ;;  %v839_v17 = vrot.slane %v838_v9, 1 }
  0xec   : > { %v740_v54 = vmax.f32 %v738_v15, %v739_v48  ;;  %v732_v26 = vrot.slane %v731_v44, 2  ;;  %v967_v14 = vsel %vm966_vm3, %v714_v56, %v707_v25  ;;  %v752_v0 = vmax.f32 %v750_v51, %v751_v47 }
  0xed   : > { %v743_v21 = vsel %vm700_vm2, %v5464_v2, -inf  ;;  %v855_v23 = vsel %vm700_vm2, %v5463_v4, -inf  ;;  %v987_v29 = vsel %vm966_vm3, %v826_v57, %v819_v27  ;;  %v721_v33 = vmax.f32 %v719_v3, %v720_v34 }
  0xee   : > { %v833_v15 = vmax.f32 %v831_v11, %v832_v22  ;;  %v4305_v48 = vmax.f32 %v850_v20, %v851_v58  ;;  %v844_v56 = vrot.slane %v843_v61, 2  ;;  %v864_v25 = vmax.f32 %v862_v8, %v863_v31  ;;  %v4336_v8 = vpop.f32.mrf.mxu1 }
  0xef   : > { %v744_v51 = vrot.slane %v743_v21, 4  ;;  %v856_v47 = vrot.slane %v855_v23, 4  ;;  %v4311_v13 = vmax.f32 %v726_v10, %v727_v7  ;;  %v4313_v4 = vmax.f32 %v838_v9, %v839_v17  ;;  %5544 = vst [vmem:[#allocation12_spill] sm:$0xff] %v4336_v8 }
  0xf0   : > { %v741_v28 = vrot.slane %v740_v54, 1  ;;  %v733_v16 = vmax.f32 %v731_v44, %v732_v26  ;;  %v753_v2 = vrot.slane %v752_v0, 2  ;;  %v5466_v3 = vmax.f32 %v4291_v5, 0.0 }
  0xf1   : > { %v745_v57 = vmax.f32 %v743_v21, %v744_v51  ;;  %v5465_v11 = vmax.f32 %v4293_v55, 0.0  ;;  %v4320_v20 = vsel %vm968_vm4, %v721_v33, %v967_v14  ;;  %v4323_v10 = vsel %vm968_vm4, %v833_v15, %v987_v29 }
  0xf2   : > { %v857_v9 = vmax.f32 %v855_v23, %v856_v47  ;;  %v4326_v17 = vmax.f32 %v843_v61, %v844_v56  ;;  %v865_v27 = vrot.slane %v864_v25, 2  ;;  %v764_v34 = vsel %vm700_vm2, %v5466_v3, -inf }
  0xf3   : > { %v876_v30 = vsel %vm700_vm2, %v5465_v11, -inf  ;;  %v4338_v22 = vmax.f32 %v740_v54, %v741_v28  ;;  %v734_v58 = vrot.slane %v733_v16, 1  ;;  %v765_v44 = vrot.slane %v764_v34, 4  ;;  %v4355_v11 = vpop.f32.mrf.mxu1 }
  0xf4   : > { %v877_v31 = vrot.slane %v876_v30, 4  ;;  %v754_v61 = vmax.f32 %v752_v0, %v753_v2  ;;  %v746_v26 = vrot.slane %v745_v57, 2  ;;  %v5467_v14 = vmax.f32 %v4307_v40, 0.0  ;;  %5545 = vst [vmem:[#allocation13_spill] sm:$0xff] %v4355_v11 }
  0xf5   : > { %v5468_v21 = vmax.f32 %v4309_v46, 0.0  ;;  %v858_v23 = vrot.slane %v857_v9, 2  ;;  %v766_v29 = vmax.f32 %v764_v34, %v765_v44  ;;  %v5476_v33 = vmax.f32 %v4334_v32, 0.0  ;;  %v4353_v44 = vpop.f32.mrf.mxu0 }
  0xf6   : > { %v5478_v15 = vmax.f32 %v4336_v8, 0.0  ;;  %v846_v56 = vrot.slane %v4326_v17, 1  ;;  %v4345_v51 = vmax.f32 %v864_v25, %v865_v27  ;;  %v757_v54 = vsel %vm700_vm2, %v5467_v14, -inf }
  0xf7   : > { %v869_v0 = vsel %vm700_vm2, %v5468_v21, -inf  ;;  %v767_v2 = vrot.slane %v766_v29, 2  ;;  %v878_v47 = vmax.f32 %v876_v30, %v877_v31  ;;  %v758_v28 = vrot.slane %v757_v54, 4  ;;  %v4367_v55 = vpop.f32.mrf.mxu0 }
  0xf8   : > { %v870_v34 = vrot.slane %v869_v0, 4  ;;  %v4357_v3 = vmax.f32 %v733_v16, %v734_v58  ;;  %v755_v25 = vrot.slane %v754_v61, 1  ;;  %v778_v27 = vsel %vm700_vm2, %v5476_v33, -inf  ;;  %v4369_v33 = vpop.f32.mrf.mxu1 }
  0xf9   : > { %v890_v14 = vsel %vm700_vm2, %v5478_v15, -inf  ;;  %v747_v21 = vmax.f32 %v745_v57, %v746_v26  ;;  %v859_v52 = vmax.f32 %v857_v9, %v858_v23  ;;  %v759_v30 = vmax.f32 %v757_v54, %v758_v28  ;;  %5546 = vst [vmem:[#allocation14_spill] sm:$0xff] %v4369_v33 }
  0xfa   : > { %v871_v31 = vmax.f32 %v869_v0, %v870_v34  ;;  %v779_v6 = vrot.slane %v778_v27, 4  ;;  %v891_v53 = vrot.slane %v890_v14, 4  ;;  %v5481_v63 = vmax.f32 %v4353_v44, 0.0 }
  0xfb   : > { %v5482_v16 = vmax.f32 %v4355_v11, 0.0  ;;  %v768_v58 = vmax.f32 %v766_v29, %v767_v2  ;;  %v879_v39 = vrot.slane %v878_v47, 2  ;;  %v760_v45 = vrot.slane %v759_v30, 2 }
  0xfc   : > { %v872_v7 = vrot.slane %v871_v31, 2  ;;  %v780_v8 = vmax.f32 %v778_v27, %v779_v6  ;;  %v892_v15 = vmax.f32 %v890_v14, %v891_v53  ;;  %v771_v57 = vsel %vm700_vm2, %v5481_v63, -inf  ;;  %v4379_v14 = vpop.f32.mrf.mxu0  ;;  %v4381_v27 = vpop.f32.mrf.mxu1 }
  0xfd   : > { %v883_v9 = vsel %vm700_vm2, %v5482_v16, -inf  ;;  %v748_v26 = vrot.slane %v747_v21, 1  ;;  %v860_v23 = vrot.slane %v859_v52, 1  ;;  %v761_v29 = vmax.f32 %v759_v30, %v760_v45  ;;  %5547 = vst [vmem:[#allocation15_spill] sm:$0xff] %v4381_v27 }
  0xfe   : > { %v873_v54 = vmax.f32 %v871_v31, %v872_v7  ;;  %v781_v0 = vrot.slane %v780_v8, 2  ;;  %v893_v2 = vrot.slane %v892_v15, 2  ;;  %v772_v28 = vrot.slane %v771_v57, 4 }
  0xff   : > { %v884_v34 = vrot.slane %v883_v9, 4  ;;  %v769_v46 = vrot.slane %v768_v58, 1  ;;  %v880_v1 = vmax.f32 %v878_v47, %v879_v39  ;;  %v5488_v53 = vmax.f32 %v4367_v55, 0.0 }
 0x100   : > { %v5490_v6 = vmax.f32 %v4369_v33, 0.0  ;;  %v762_v63 = vrot.slane %v761_v29, 1  ;;  %v874_v16 = vrot.slane %v873_v54, 1  ;;  %v773_v11 = vmax.f32 %v771_v57, %v772_v28 }
 0x101   : > { %v885_v12 = vmax.f32 %v883_v9, %v884_v34  ;;  %v4384_v45 = vmax.f32 %v4326_v17, %v846_v56  ;;  %v4386_v7 = vmax.f32 %v754_v61, %v755_v25  ;;  %v792_v39 = vsel %vm700_vm2, %v5488_v53, -inf  ;;  %v4398_v61 = vpop.f32.mrf.mxu0  ;;  %v4400_v25 = vpop.f32.mrf.mxu1 }
 0x102   : > { %v904_v47 = vsel %vm700_vm2, %v5490_v6, -inf  ;;  %v782_v30 = vmax.f32 %v780_v8, %v781_v0  ;;  %v894_v31 = vmax.f32 %v892_v15, %v893_v2  ;;  %v774_v19 = vrot.slane %v773_v11, 2  ;;  %5548 = vst [vmem:[#allocation16_spill] sm:$0xff] %v4400_v25 }
 0x103   : > { %v886_v43 = vrot.slane %v885_v12, 2  ;;  %v4394_v50 = vmax.f32 %v747_v21, %v748_v26  ;;  %v4396_v57 = vmax.f32 %v859_v52, %v860_v23  ;;  %v793_v17 = vrot.slane %v792_v39, 4 }
 0x104   : > { %v905_v56 = vrot.slane %v904_v47, 4  ;;  %v770_v9 = vmax.f32 %v768_v58, %v769_v46  ;;  %v881_v28 = vrot.slane %v880_v1, 1  ;;  %v763_v34 = vmax.f32 %v761_v29, %v762_v63 }
 0x105   : > { %v875_v53 = vmax.f32 %v873_v54, %v874_v16  ;;  %v775_v33 = vmax.f32 %v773_v11, %v774_v19  ;;  %v887_v6 = vmax.f32 %v885_v12, %v886_v43  ;;  %v5492_v8 = vmax.f32 %v4379_v14, 0.0 }
 0x106   : > { %v5491_v21 = vmax.f32 %v4381_v27, 0.0  ;;  %v783_v15 = vrot.slane %v782_v30, 1  ;;  %v895_v52 = vrot.slane %v894_v31, 1  ;;  %v5493_v26 = vmax.f32 %v4398_v61, 0.0 }
 0x107   : > { %v5496_v23 = vmax.f32 %v4400_v25, 0.0  ;;  %v794_v0 = vmax.f32 %v792_v39, %v793_v17  ;;  %v906_v2 = vmax.f32 %v904_v47, %v905_v56  ;;  %v785_v46 = vsel %vm700_vm2, %v5492_v8, -inf  ;;  %v4419_v39 = vpop.f32.mrf.mxu0 }
 0x108   : > { %v897_v63 = vsel %vm700_vm2, %v5491_v21, -inf  ;;  %v882_v19 = vmax.f32 %v880_v1, %v881_v28  ;;  %v980_v43 = vsel %vm966_vm3, %v770_v9, %v763_v34  ;;  %v786_v12 = vrot.slane %v785_v46, 4  ;;  %v4422_v9 = vpop.f32.mrf.mxu1 }
 0x109   : > { %v898_v11 = vrot.slane %v897_v63, 4  ;;  %v776_v16 = vrot.slane %v775_v33, 1  ;;  %v888_v58 = vrot.slane %v887_v6, 1  ;;  %v806_v29 = vsel %vm700_vm2, %v5493_v26, -inf }
 0x10a   : > { %v918_v54 = vsel %vm700_vm2, %v5496_v23, -inf  ;;  %v994_v1 = vsel %vm966_vm3, %v882_v19, %v875_v53  ;;  %v784_v47 = vmax.f32 %v782_v30, %v783_v15  ;;  %v787_v17 = vmax.f32 %v785_v46, %v786_v12 }
 0x10b   : > { %v899_v56 = vmax.f32 %v897_v63, %v898_v11  ;;  %v896_v28 = vmax.f32 %v894_v31, %v895_v52  ;;  %v795_v34 = vrot.slane %v794_v0, 2  ;;  %v907_v21 = vrot.slane %v906_v2, 2 }
 0x10c   : > { %v807_v8 = vrot.slane %v806_v29, 4  ;;  %v788_v26 = vrot.slane %v787_v17, 2  ;;  %v919_v25 = vrot.slane %v918_v54, 4  ;;  %v682_v23 = vmax.f32 %v4419_v39, 0.0 }
 0x10d   : > { %v900_v27 = vrot.slane %v899_v56, 2  ;;  %v777_v60 = vmax.f32 %v775_v33, %v776_v16  ;;  %v889_v38 = vmax.f32 %v887_v6, %v888_v58  ;;  %v698_v53 = vmax.f32 %v4422_v9, 0.0 }
 0x10e   : > { %v808_v42 = vmax.f32 %v806_v29, %v807_v8  ;;  %v789_v30 = vmax.f32 %v787_v17, %v788_v26  ;;  %v920_v46 = vmax.f32 %v918_v54, %v919_v25  ;;  %v799_v31 = vsel %vm700_vm2, %v682_v23, -inf }
 0x10f   : > { %v901_v15 = vmax.f32 %v899_v56, %v900_v27  ;;  %v796_v52 = vmax.f32 %v794_v0, %v795_v34  ;;  %v800_v19 = vrot.slane %v799_v31, 4  ;;  %v911_v12 = vsel %vm700_vm2, %v698_v53, -inf }
 0x110   : > { %v809_v63 = vrot.slane %v808_v42, 2  ;;  %v908_v11 = vmax.f32 %v906_v2, %v907_v21  ;;  %v790_v33 = vrot.slane %v789_v30, 1  ;;  %v912_v6 = vrot.slane %v911_v12, 4 }
 0x111   : > { %v971_v8 = vsel %vm970_vm5, %v4311_v13, %v4320_v20  ;;  %v902_v27 = vrot.slane %v901_v15, 1  ;;  %v921_v25 = vrot.slane %v920_v46, 2  ;;  %v801_v26 = vmax.f32 %v799_v31, %v800_v19 }
 0x112   : > { %v973_v16 = vsel %vm972_vm6, %v4357_v3, %v971_v8  ;;  %v981_v0 = vsel %vm968_vm4, %v777_v60, %v980_v43  ;;  %v995_v58 = vsel %vm968_vm4, %v889_v38, %v994_v1  ;;  %v810_v29 = vmax.f32 %v808_v42, %v809_v63 }
 0x113   : > { %v913_v54 = vmax.f32 %v911_v12, %v912_v6  ;;  %v797_v17 = vrot.slane %v796_v52, 1  ;;  %v791_v21 = vmax.f32 %v789_v30, %v790_v33  ;;  %v802_v2 = vrot.slane %v801_v26, 2 }
 0x114   : > { %v975_v56 = vsel %vm974_vm7, %v4338_v22, %v973_v16  ;;  %v909_v34 = vrot.slane %v908_v11, 1  ;;  %v989_v3 = vsel %vm970_vm5, %v4313_v4, %v4323_v10  ;;  %v903_v60 = vmax.f32 %v901_v15, %v902_v27 }
 0x115   : > { %v914_v13 = vrot.slane %v913_v54, 2  ;;  %v977_v20 = vsel %vm976_vm8, %v4394_v50, %v975_v56  ;;  %v922_v43 = vmax.f32 %v920_v46, %v921_v25  ;;  %v803_v38 = vmax.f32 %v801_v26, %v802_v2  ;;  %v5567_v2 = vld [vmem:[#allocation2_spill] sm:$0xff]  ;;  %v5569_v56 = vld [vmem:[#allocation5_spill] sm:$0xff] }
 0x116   : > { %v979_v42 = vsel %vm978_vm9, %v4386_v7, %v977_v20  ;;  %v982_v1 = vsel %vm970_vm5, %v784_v47, %v981_v0  ;;  %v811_v30 = vrot.slane %v810_v29, 1  ;;  %v990_v22 = vsel %vm972_vm6, %v4384_v45, %v989_v3  ;;  %v5577_v3 = vld [vmem:[#allocation9_spill] sm:$0xff] }
 0x117   : > { %v915_v31 = vmax.f32 %v913_v54, %v914_v13  ;;  %3816 = vmatprep.mubr.msk.f32.mxu1 %vm700_vm2, %v979_v42  ;;  %v5549_v50 = vrot.slane %v4305_v48, 1  ;;  %v867_v4 = vrot.slane %v4345_v51, 1  ;;  %v983_v10 = vsel %vm972_vm6, %v791_v21, %v982_v1  ;;  %v5575_v13 = vld [vmem:[#allocation6_spill] sm:$0xff]  ;;  %v5581_v42 = vld [vmem:[#allocation11_spill] sm:$0xff] }
 0x118   : > { %v804_v15 = vrot.slane %v803_v38, 1  ;;  %v798_v46 = vmax.f32 %v796_v52, %v797_v17  ;;  %v910_v7 = vmax.f32 %v908_v11, %v909_v34  ;;  %v996_v47 = vsel %vm970_vm5, %v896_v28, %v995_v58  ;;  %v1094_v28 = vld [vmem:[%s5448_s2] sm:$0xff]  ;;  %v5571_v34 = vld [vmem:[#allocation4_spill] sm:$0xff] }
 0x119   : > { %v854_v63 = vmax.f32 %v4305_v48, %v5549_v50  ;;  %v916_v19 = vrot.slane %v915_v31, 1  ;;  %v923_v12 = vrot.slane %v922_v43, 1  ;;  %v997_v45 = vsel %vm972_vm6, %v903_v60, %v996_v47 }
 0x11a   : > { %v805_v33 = vmax.f32 %v803_v38, %v804_v15  ;;  %v812_v8 = vmax.f32 %v810_v29, %v811_v30  ;;  %v984_v48 = vsel %vm974_vm7, %v798_v46, %v983_v10  ;;  %v868_v26 = vmax.f32 %v4345_v51, %v867_v4  ;;  %v5583_v30 = vld [vmem:[#allocation10_spill] sm:$0xff]  ;;  %v5589_v10 = vld [vmem:[#allocation15_spill] sm:$0xff] }
 0x11b   : > { %v991_v6 = vsel %vm974_vm7, %v854_v63, %v990_v22  ;;  %v917_v27 = vmax.f32 %v915_v31, %v916_v19  ;;  %v998_v16 = vsel %vm974_vm7, %v910_v7, %v997_v45  ;;  %v924_v29 = vmax.f32 %v922_v43, %v923_v12  ;;  %v5579_v43 = vld [vmem:[#allocation8_spill] sm:$0xff]  ;;  %v5585_v22 = vld [vmem:[#allocation13_spill] sm:$0xff]  ;;  %v5591_v46 = vld [vmem:[#allocation14_spill] sm:$0xff] }
 0x11c   : > { %v992_v25 = vsel %vm976_vm8, %v4396_v57, %v991_v6  ;;  %v985_v52 = vsel %vm976_vm8, %v805_v33, %v984_v48  ;;  %v5550_v57 = vmax.f32 %v4195_v41, 0.0  ;;  %v5551_v54 = vmax.f32 %v4188_v37, 0.0  ;;  %v5587_v63 = vld [vmem:[#allocation12_spill] sm:$0xff]  ;;  %v2226_v12 = vld [vmem:[%s5452_s6 + $0x8] sm:$0xff]  ;;  %v4576_v33 = vpop.permute.xlu0 %1842  ;;  %v2225_v6 = vld [vmem:[%s5452_s6] sm:$0xff] }
 0x11d   : > { %v986_v11 = vsel %vm978_vm9, %v812_v8, %v985_v52  ;;  %v993_v0 = vsel %vm978_vm9, %v868_v26, %v992_v25  ;;  %v999_v58 = vsel %vm976_vm8, %v917_v27, %v998_v16  ;;  %v5552_v17 = vmax.f32 %v4221_v59, 0.0  ;;  %v5593_v19 = vld [vmem:[#allocation16_spill] sm:$0xff]  ;;  %3874 = vmatprep.subr.mxu0 %v2226_v12  ;;  %v4590_v8 = vld [vmem:[%s5451_s5 + $0x8] sm:$0xff]  ;;  %v4593_v26 = vpop.permute.xlu1 %1850 }
 0x11e   : > { %3817 = vmatmul.mubr.msk.f32.vlgmr.msra.gmra.mxu1 %vm700_vm2, %v986_v11  ;;  %v1000_v51 = vsel %vm978_vm9, %v924_v29, %v999_v58  ;;  %v5554_v21 = vmax.f32 %v4247_v36, 0.0  ;;  %v5555_v41 = vmax.f32 %v4241_v18, 0.0  ;;  %v5556_v37 = vmax.f32 %v4277_v24, 0.0  ;;  %3875 = vmatpush3.msra.mxu0 %v2226_v12 }
 0x11f   : > { %3823 = vmatpush3.msra.mxu1 %v4176_v35  ;;  %3819 = vmatprep.mubr.msk.f32.mxu1 %vm700_vm2, %v993_v0  ;;  %v5553_v35 = vmax.f32 %v4207_v49, 0.0  ;;  %v5557_v59 = vmax.f32 %v4261_v62, 0.0  ;;  %v5558_v49 = vmax.f32 %v4307_v40, 0.0  ;;  %v5559_v36 = vmax.f32 %v4291_v5, 0.0  ;;  %v3573_v0 = vld [vmem:[%s5450_s4] ss:$0 sm:$0xff] }
 0x120   : > { %3824 = vmatprep.subr.mxu1 %v1094_v28  ;;  %v5560_v18 = vmax.f32 %v4353_v44, 0.0  ;;  %v5561_v24 = vmax.f32 %v4334_v32, 0.0  ;;  %v5562_v62 = vmax.f32 %v4379_v14, 0.0  ;;  %v5563_v40 = vmax.f32 %v4367_v55, 0.0  ;;  %v5565_v44 = vld [vmem:[#allocation3_spill] sm:$0xff]  ;;  %v4581_v45 = vpop.permute.xlu0 %1846  ;;  %3876 = vmatprep.subr.mxu0 %v2225_v6 }
 0x121   : > { %3825 = vmatpush3.msra.mxu1 %v1094_v28  ;;  %v5564_v5 = vmax.f32 %v4398_v61, 0.0  ;;  %v5566_v32 = vmax.f32 %v5565_v44, 0.0  ;;  %v5568_v14 = vmax.f32 %v5567_v2, 0.0  ;;  %v5570_v55 = vmax.f32 %v5569_v56, 0.0  ;;  %5595 = vst [vmem:[#allocation3_spill] sm:$0xff] %v4576_v33  ;;  %5596 = vst [vmem:[#allocation2_spill] sm:$0xff] %v4581_v45  ;;  %3877 = vmatpush3.msra.mxu0 %v2225_v6  ;;  %v4597_v16 = vpop.permute.xlu1 %1874 }
 0x122   : > { %3820 = vmatmul.mubr.msk.f32.gmra.mxu1 %vm700_vm2, %v1000_v51  ;;  %v5572_v39 = vmax.f32 %v5571_v34, 0.0  ;;  %v5576_v20 = vmax.f32 %v5575_v13, 0.0  ;;  %v5578_v60 = vmax.f32 %v5577_v3, 0.0  ;;  %v5580_v38 = vmax.f32 %v5579_v43, 0.0  ;;  %3884 = vmatprep.subr.mxu0 %v4590_v8  ;;  %5601 = vst [vmem:[#allocation9_spill] sm:$0xff] %v4597_v16 }
 0x123   : > { %3826 = vmatprep.mubr.msk.f32.mxu1 %vm700_vm2, %v5550_v57  ;;  %v5582_v1 = vmax.f32 %v5581_v42, 0.0  ;;  %v5584_v31 = vmax.f32 %v5583_v30, 0.0  ;;  %v5586_v50 = vmax.f32 %v5585_v22, 0.0  ;;  %v5588_v4 = vmax.f32 %v5587_v63, 0.0 }
 0x124   : > { %v5590_v15 = vmax.f32 %v5589_v10, 0.0  ;;  %v5592_v7 = vmax.f32 %v5591_v46, 0.0  ;;  %v5594_v47 = vmax.f32 %v5593_v19, 0.0  ;;  %v4583_v9 = vpop.permute.xlu0 %1878  ;;  %v3960_v27 = vmov 1966171168  }
 0x125   : > { %5597 = vst [vmem:[#allocation5_spill] sm:$0xff] %v4583_v9  ;;  %v1423_v48 = vunpack.c.l.s4 %v3960_v27  ;;  %v1425_v25 = vlaneseq }
 0x126   : > { %3827 = vmatmul.mubr.msk.f32.vlgmr.msra.gmra.mxu1 %vm700_vm2, %v5551_v54 }
 0x127   : > { %3829 = vmatprep.mubr.msk.f32.mxu1 %vm700_vm2, %v5552_v17  ;;  %v1424_v11 = vunpack.c.0.s8 %v1423_v48  ;;  %v1426_v28 = vshrl.u32 %v1425_v25, 7 }
 0x129   : > { %v4602_v58 = vsub.s32 %v1424_v11, %v1426_v28 }
 0x12a   : > { %3830 = vmatmul.mubr.msk.f32.gmra.mxu1 %vm700_vm2, %v5553_v35 }
 0x12b   : > { %3832 = vmatprep.mubr.msk.f32.mxu1 %vm700_vm2, %v5554_v21  ;;  %v4607_v21 = vpop.permute.xlu1 %1854 }
 0x12c   : > { %5603 = vst [vmem:[#allocation11_spill] sm:$0xff] %v4607_v21 }
 0x12e   : > { %3833 = vmatmul.mubr.msk.f32.gmra.mxu1 %vm700_vm2, %v5555_v41 }
 0x12f   : > { %3835 = vmatprep.mubr.msk.f32.mxu1 %vm700_vm2, %v5556_v37 }
 0x132   : > { %3836 = vmatmul.mubr.msk.f32.gmra.mxu1 %vm700_vm2, %v5557_v59 }
 0x133   : > { %3838 = vmatprep.mubr.msk.f32.mxu1 %vm700_vm2, %v5558_v49 }
 0x136   : > { %3839 = vmatmul.mubr.msk.f32.gmra.mxu1 %vm700_vm2, %v5559_v36 }
 0x137   : > { %3841 = vmatprep.mubr.msk.f32.mxu1 %vm700_vm2, %v5560_v18 }
 0x13a   : > { %3842 = vmatmul.mubr.msk.f32.gmra.mxu1 %vm700_vm2, %v5561_v24 }
 0x13b   : > { %3844 = vmatprep.mubr.msk.f32.mxu1 %vm700_vm2, %v5562_v62 }
 0x13e   : > { %3845 = vmatmul.mubr.msk.f32.gmra.mxu1 %vm700_vm2, %v5563_v40  ;;  %v4612_v40 = vsub.s32 0, %v1426_v28 }
 0x13f   : > { %3847 = vmatprep.mubr.msk.f32.mxu1 %vm700_vm2, %v682_v23  ;;  %v5573_v23 = vld [vmem:[#allocation7_spill] sm:$0xff] }
 0x140   : > { %v5574_v61 = vmax.f32 %v5573_v23, 0.0  ;;  %5599 = vst [vmem:[#allocation7_spill] sm:$0xff] %v4593_v26  ;;  %v4626_v23 = vpop.permute.xlu1 %1858 }
 0x141   : > { %5605 = vst [vmem:[#allocation13_spill] sm:$0xff] %v4626_v23 }
 0x142   : > { %3848 = vmatmul.mubr.msk.f32.gmra.mxu1 %vm700_vm2, %v5564_v5 }
 0x143   : > { %3850 = vmatprep.mubr.msk.f32.mxu1 %vm700_vm2, %v5566_v32 }
 0x146   : > { %3851 = vmatmul.mubr.msk.f32.gmra.mxu1 %vm700_vm2, %v5568_v14 }
 0x147   : > { %3853 = vmatprep.mubr.msk.f32.mxu1 %vm700_vm2, %v5570_v55 }
 0x14a   : > { %3854 = vmatmul.mubr.msk.f32.gmra.mxu1 %vm700_vm2, %v5572_v39 }
 0x14b   : > { %3856 = vmatprep.mubr.msk.f32.mxu1 %vm700_vm2, %v5574_v61 }
 0x14e   : > { %3857 = vmatmul.mubr.msk.f32.gmra.mxu1 %vm700_vm2, %v5576_v20 }
 0x14f   : > { %3859 = vmatprep.mubr.msk.f32.mxu1 %vm700_vm2, %v5578_v60 }
 0x152   : > { %3860 = vmatmul.mubr.msk.f32.gmra.mxu1 %vm700_vm2, %v5580_v38 }
 0x153   : > { %3862 = vmatprep.mubr.msk.f32.mxu1 %vm700_vm2, %v5582_v1 }
 0x156   : > { %3863 = vmatmul.mubr.msk.f32.gmra.mxu1 %vm700_vm2, %v5584_v31 }
 0x157   : > { %3865 = vmatprep.mubr.msk.f32.mxu1 %vm700_vm2, %v5586_v50 }
 0x15a   : > { %3866 = vmatmul.mubr.msk.f32.gmra.mxu1 %vm700_vm2, %v5588_v4 }
 0x15b   : > { %3868 = vmatprep.mubr.msk.f32.mxu1 %vm700_vm2, %v5590_v15 }
 0x15e   : > { %3869 = vmatmul.mubr.msk.f32.gmra.mxu1 %vm700_vm2, %v5592_v7 }
 0x15f   : > { %3871 = vmatprep.mubr.msk.f32.mxu1 %vm700_vm2, %v698_v53  ;;  %v4585_v53 = vpop.permute.xlu0 %1882 }
 0x160   : > { %5598 = vst [vmem:[#allocation4_spill] sm:$0xff] %v4585_v53 }
 0x162   : > { %3872 = vmatmul.mubr.msk.f32.gmra.mxu1 %vm700_vm2, %v5594_v47 }
 0x163   : > { %v4595_v52 = vpop.permute.xlu0 %1886 }
 0x164   : > { %5600 = vst [vmem:[#allocation6_spill] sm:$0xff] %v4595_v52 }
 0x167   : > { %v4604_v29 = vpop.permute.xlu0 %1890 }
 0x168   : > { %5602 = vst [vmem:[#allocation8_spill] sm:$0xff] %v4604_v29 }
 0x16b   : > { %v4610_v36 = vpop.permute.xlu0 %1910 }
 0x16c   : > { %5604 = vst [vmem:[#allocation10_spill] sm:$0xff] %v4610_v36 }
 0x16f   : > { %v4637_v30 = vpop.permute.xlu0 %1894 }
 0x170   : > { %5606 = vst [vmem:[#allocation12_spill] sm:$0xff] %v4637_v30 }
 0x1de   : > { %v3818_v51 = vpop.f32.mrf.mxu1 }
 0x1df   : > { %v1081_v57 = vadd.f32 %v3818_v51, %v3573_v0 }
 0x1e0   : > { %v1075_v54 = vpop.f32.mrf.mxu1 }
 0x1e1   : > { %v1477_v17 = vrot.slane %v1081_v57, %v4602_v58  ;;  %v1076_v35 = vadd.f32 %v3573_v0, %v1075_v54  ;;  %v1470_v37 = vcombine.high %v1081_v57, %v1081_v57 }
 0x1e2   : > { %v3821_v41 = vpop.f32.mrf.mxu1 }
 0x1e3   : > { %v1421_v59 = vcombine.high %v1076_v35, %v1076_v35  ;;  %v1428_v49 = vrot.slane %v1076_v35, %v4602_v58  ;;  %v1485_v18 = vcombine.high %v1477_v17, %v1477_v17  ;;  %v1091_v24 = vadd.f32 %v3821_v41, %v3573_v0 }
 0x1e4   : > { %v1085_v62 = vpop.f32.mrf.mxu1  ;;  %v4617_v2 = vrot.slane %v1477_v17, %v4602_v58  ;;  %v4622_v55 = vrot.slane %v1470_v37, %v4602_v58 }
 0x1e5   : > { %v1435_v5 = vrot.slane %v1421_v59, %v4602_v58  ;;  %v1436_v44 = vcombine.high %v1428_v49, %v1428_v49  ;;  %v1444_v32 = vrot.slane %v1428_v49, %v4602_v58  ;;  %v4619_v14 = vadd.f32 %v3573_v0, %v1085_v62  ;;  %v4658_v0 = vpop.permute.xlu1 %1862 }
 0x1e6   : > { %v3828_v56 = vpop.f32.mrf.mxu1  ;;  %v1568_v61 = vcombine.high %v1091_v24, %v1091_v24  ;;  %v4629_v13 = vrot.slane %v1091_v24, %v4602_v58  ;;  %v4633_v42 = vrot.slane %v1485_v18, %v4602_v58  ;;  %5607 = vst [vmem:[#allocation15_spill] sm:$0xff] %v4658_v0  ;;  %v4668_v18 = vpop.permute.xlu0 %1938 }
 0x1e7   : > { %v1458_v34 = vrot.slane %v1436_v44, %v4602_v58  ;;  %v1620_v39 = vrot.slane %v1444_v32, %v4612_v40  ;;  %v1466_v3 = vcombine.high %v1444_v32, %v1444_v32  ;;  %v1437_v60 = vcombine.high %v1435_v5, %v1435_v5 }
 0x1e8   : > { %v1258_v20 = vpop.f32.mrf.mxu1  ;;  %v1519_v31 = vcombine.high %v4619_v14, %v4619_v14  ;;  %v1451_v4 = vrot.slane %v1435_v5, %v4602_v58  ;;  %v4645_v10 = vrot.slane %v4619_v14, %v4602_v58  ;;  %v4649_v19 = vrot.slane %v1568_v61, %v4602_v58 }
 0x1e9   : > { %v1624_v43 = vrot.slane %v1458_v34, %v4612_v40  ;;  %v1777_v38 = vadd.f32 %v1620_v39, %v1258_v20  ;;  %v1468_v50 = vcombine.high %v1458_v34, %v1458_v34  ;;  %v1465_v63 = vrot.slane %v1437_v60, %v4602_v58 }
 0x1ea   : > { %v3831_v22 = vpop.f32.mrf.mxu1  ;;  %v1628_v7 = vrot.slane %v1466_v3, %v4612_v40  ;;  %v1636_v54 = vrot.slane %v1451_v4, %v4612_v40  ;;  %v1467_v17 = vcombine.high %v1451_v4, %v1451_v4  ;;  %v1656_v35 = vrot.slane %v4633_v42, %v4612_v40 }
 0x1eb   : > { %v1778_v15 = vadd.f32 %v3828_v56, %v1624_v43  ;;  %v1809_v46 = vmax.f32 %v1777_v38, 0.0  ;;  %v1632_v12 = vrot.slane %v1468_v50, %v4612_v40  ;;  %v1469_v27 = vcombine.high %v1465_v63, %v1465_v63 }
 0x1ec   : > { %v1268_v6 = vpop.f32.mrf.mxu1  ;;  %v1640_v28 = vrot.slane %v1465_v63, %v4612_v40  ;;  %v1644_v38 = vrot.slane %v1467_v17, %v4612_v40  ;;  %v5611_v14 = vcombine.high %v4633_v42, %v4633_v42 }
 0x1ed   : > { %v1810_v48 = vmax.f32 %v1778_v15, 0.0  ;;  %v4655_v25 = vmul.f32 %v4576_v33, %v1809_v46  ;;  %v1779_v11 = vadd.f32 %v1628_v7, %v1268_v6  ;;  %v1780_v51 = vadd.f32 %v3831_v22, %v1632_v12  ;;  %v4687_v15 = vpop.permute.xlu1 %1906 }
 0x1ee   : > { %v3834_v57 = vpop.f32.mrf.mxu1  ;;  %v1648_v44 = vrot.slane %v1469_v27, %v4612_v40  ;;  %5608 = vst [vmem:[#allocation14_spill] sm:$0xff] %v4687_v15 }
 0x1ef   : > { %v4664_v41 = vmul.f32 %v4581_v45, %v1810_v48  ;;  %v2001_v37 = vsel %vm700_vm2, %v4655_v25, -inf  ;;  %v1811_v59 = vmax.f32 %v1779_v11, 0.0  ;;  %v1782_v49 = vadd.f32 %v3834_v57, %v1640_v28  ;;  %v4696_v57 = vpop.permute.xlu0 %1870 }
 0x1f0   : > { %v2002_v24 = vrot.slane %v2001_v37, 4  ;;  %v1812_v62 = vmax.f32 %v1780_v51, 0.0  ;;  %v1278_v5 = vpop.f32.mrf.mxu1  ;;  %5609 = vst [vmem:[#allocation16_spill] sm:$0xff] %v4696_v57 }
 0x1f1   : > { %v2008_v56 = vsel %vm700_vm2, %v4664_v41, -inf  ;;  %v4676_v34 = vmul.f32 %v4593_v26, %v1811_v59  ;;  %v1814_v39 = vmax.f32 %v1782_v49, 0.0  ;;  %v1781_v61 = vadd.f32 %v1636_v54, %v1278_v5 }
 0x1f2   : > { %v2009_v20 = vrot.slane %v2008_v56, 4  ;;  %v2003_v3 = vmax.f32 %v2001_v37, %v2002_v24  ;;  %v4679_v60 = vmul.f32 %v4607_v21, %v1812_v62  ;;  %v3837_v43 = vpop.f32.mrf.mxu1 }
 0x1f3   : > { %v2015_v22 = vsel %vm700_vm2, %v4676_v34, -inf  ;;  %v4685_v50 = vmul.f32 %v4658_v0, %v1814_v39  ;;  %v1813_v63 = vmax.f32 %v1781_v61, 0.0  ;;  %v1784_v4 = vadd.f32 %v3837_v43, %v1648_v44 }
 0x1f4   : > { %v2010_v46 = vmax.f32 %v2008_v56, %v2009_v20  ;;  %v2004_v7 = vrot.slane %v2003_v3, 2  ;;  %v2022_v12 = vsel %vm700_vm2, %v4679_v60, -inf  ;;  %v2016_v6 = vrot.slane %v2015_v22, 4  ;;  %v1288_v27 = vpop.f32.mrf.mxu1 }
 0x1f5   : > { %v2023_v48 = vrot.slane %v2022_v12, 4  ;;  %v2036_v11 = vsel %vm700_vm2, %v4685_v50, -inf  ;;  %v4694_v28 = vmul.f32 %v4626_v23, %v1813_v63  ;;  %v1816_v51 = vmax.f32 %v1784_v4, 0.0 }
 0x1f6   : > { %v2011_v54 = vrot.slane %v2010_v46, 2  ;;  %v2005_v17 = vmax.f32 %v2003_v3, %v2004_v7  ;;  %v2017_v37 = vmax.f32 %v2015_v22, %v2016_v6  ;;  %v2037_v59 = vrot.slane %v2036_v11, 4  ;;  %v3840_v49 = vpop.f32.mrf.mxu1  ;;  %v4707_v7 = vpop.permute.xlu1 %1866 }
 0x1f7   : > { %v2024_v24 = vmax.f32 %v2022_v12, %v2023_v48  ;;  %v2029_v62 = vsel %vm700_vm2, %v4694_v28, -inf  ;;  %v4701_v5 = vmul.f32 %v4696_v57, %v1816_v51  ;;  %v1783_v44 = vadd.f32 %v1644_v38, %v1288_v27  ;;  %5610 = vst [vmem:[#allocation17_spill] sm:$0xff] %v4707_v7 }
 0x1f8   : > { %v2012_v56 = vmax.f32 %v2010_v46, %v2011_v54  ;;  %v2018_v39 = vrot.slane %v2017_v37, 2  ;;  %v2038_v61 = vmax.f32 %v2036_v11, %v2037_v59  ;;  %v1298_v20 = vpop.f32.mrf.mxu1  ;;  %v1515_v43 = vcombine.high %v4617_v2, %v4617_v2 }
 0x1f9   : > { %v2025_v63 = vrot.slane %v2024_v24, 2  ;;  %v2030_v3 = vrot.slane %v2029_v62, 4  ;;  %v2050_v22 = vsel %vm700_vm2, %v4701_v5, -inf  ;;  %v1815_v4 = vmax.f32 %v1783_v44, 0.0 }
 0x1fa   : > { %v2013_v12 = vrot.slane %v2012_v56, 1  ;;  %v2006_v6 = vrot.slane %v2005_v17, 1  ;;  %v2019_v48 = vmax.f32 %v2017_v37, %v2018_v39  ;;  %v2039_v51 = vrot.slane %v2038_v61, 2  ;;  %v3843_v38 = vpop.f32.mrf.mxu1  ;;  %v4743_v42 = vpop.permute.xlu1 %1914 }
 0x1fb   : > { %v2026_v46 = vmax.f32 %v2024_v24, %v2025_v63  ;;  %v2031_v27 = vmax.f32 %v2029_v62, %v2030_v3  ;;  %v2051_v11 = vrot.slane %v2050_v22, 4  ;;  %v4710_v54 = vmul.f32 %v4707_v7, %v1815_v4  ;;  %5614 = vst [vmem:[#allocation19_spill] sm:$0xff] %v4743_v42 }
 0x1fc   : > { %v2014_v59 = vmax.f32 %v2012_v56, %v2013_v12  ;;  %v2020_v47 = vrot.slane %v2019_v48, 1  ;;  %v2040_v1 = vmax.f32 %v2038_v61, %v2039_v51  ;;  %v1786_v44 = vadd.f32 %v3840_v49, %v1656_v35  ;;  %v1308_v32 = vpop.f32.mrf.mxu1 }
 0x1fd   : > { %v4719_v37 = vrot.slane %v1519_v31, %v4602_v58  ;;  %v2027_v62 = vrot.slane %v2026_v46, 1  ;;  %v2043_v56 = vsel %vm700_vm2, %v4710_v54, -inf  ;;  %v2007_v39 = vmax.f32 %v2005_v17, %v2006_v6 }
 0x1fe   : > { %v2032_v61 = vrot.slane %v2031_v27, 2  ;;  %v2044_v63 = vrot.slane %v2043_v56, 4  ;;  %v3846_v3 = vpop.f32.mrf.mxu1  ;;  %v1486_v35 = vcombine.high %v4622_v55, %v4622_v55  ;;  %v4727_v49 = vmax.f32 %v2050_v22, %v2051_v11 }
 0x1ff   : > { %v1818_v4 = vmax.f32 %v1786_v44, 0.0  ;;  %v1664_v31 = vrot.slane %v5611_v14, %v4612_v40  ;;  %v1660_v12 = vrot.slane %v1515_v43, %v4612_v40  ;;  %v2266_v51 = vsel %vm966_vm3, %v2014_v59, %v2007_v39 }
 0x200   : > { %v2021_v24 = vmax.f32 %v2019_v48, %v2020_v47  ;;  %v2041_v17 = vrot.slane %v2040_v1, 1  ;;  %v5612_v6 = vrot.slane %v4617_v2, %v4612_v40  ;;  %v1318_v57 = vpop.f32.mrf.mxu1  ;;  %v4738_v23 = vmax.f32 %v2026_v46, %v2027_v62 }
 0x201   : > { %v2045_v22 = vmax.f32 %v2043_v56, %v2044_v63  ;;  %v4741_v11 = vmul.f32 %v4583_v9, %v1818_v4  ;;  %v1788_v44 = vadd.f32 %v3843_v38, %v1664_v31  ;;  %v4745_v14 = vmax.f32 %v2031_v27, %v2032_v61  ;;  %v4781_v9 = vpop.permute.xlu0 %1918 }
 0x202   : > { %v1785_v7 = vadd.f32 %v5612_v6, %v1298_v20  ;;  %v1787_v59 = vadd.f32 %v1660_v12, %v1308_v32  ;;  %v1514_v47 = vrot.slane %v1486_v35, %v4602_v58  ;;  %v3849_v48 = vpop.f32.mrf.mxu1  ;;  %v1500_v62 = vrot.slane %v4622_v55, %v4602_v58  ;;  %5618 = vst [vmem:[#allocation23_spill] sm:$0xff] %v4781_v9 }
 0x203   : > { %5613 = vst [vmem:[#allocation18_spill] sm:$0xff] %v4741_v11  ;;  %v2064_v20 = vsel %vm700_vm2, %v4741_v11, -inf  ;;  %v1820_v46 = vmax.f32 %v1788_v44, 0.0  ;;  %v4754_v38 = vsel %vm968_vm4, %v2021_v24, %v2266_v51  ;;  %v2046_v39 = vrot.slane %v2045_v22, 2 }
 0x204   : > { %v1817_v43 = vmax.f32 %v1785_v7, 0.0  ;;  %v2065_v56 = vrot.slane %v2064_v20, 4  ;;  %v1819_v32 = vmax.f32 %v1787_v59, 0.0  ;;  %v1328_v7 = vpop.f32.mrf.mxu1  ;;  %v1672_v63 = vrot.slane %v1514_v47, %v4612_v40  ;;  %v4773_v59 = vpop.permute.xlu1 %1942 }
 0x205   : > { %v4760_v61 = vmul.f32 %v4595_v52, %v1820_v46  ;;  %v1668_v35 = vrot.slane %v1500_v62, %v4612_v40  ;;  %v1518_v31 = vcombine.high %v1514_v47, %v1514_v47  ;;  %5617 = vst [vmem:[#allocation22_spill] sm:$0xff] %v4773_v59  ;;  %v4775_v46 = vmax.f32 %v2040_v1, %v2041_v17 }
 0x206   : > { %v4757_v27 = vmul.f32 %v4597_v16, %v1817_v43  ;;  %v2066_v4 = vmax.f32 %v2064_v20, %v2065_v56  ;;  %v4767_v24 = vmul.f32 %v4585_v53, %v1819_v32  ;;  %v4769_v12 = vpop.f32.mrf.mxu1  ;;  %v1790_v44 = vadd.f32 %v3846_v3, %v1672_v63 }
 0x207   : > { %5615 = vst [vmem:[#allocation20_spill] sm:$0xff] %v4760_v61  ;;  %v2078_v6 = vsel %vm700_vm2, %v4760_v61, -inf  ;;  %v1789_v43 = vadd.f32 %v1668_v35, %v1318_v57  ;;  %v2047_v0 = vmax.f32 %v2045_v22, %v2046_v39  ;;  %v1680_v57 = vrot.slane %v1518_v31, %v4612_v40 }
 0x208   : > { %v2057_v55 = vsel %vm700_vm2, %v4757_v27, -inf  ;;  %5616 = vst [vmem:[#allocation21_spill] sm:$0xff] %v4767_v24  ;;  %v2067_v20 = vrot.slane %v2066_v4, 2  ;;  %v2079_v56 = vrot.slane %v2078_v6, 4  ;;  %v2071_v2 = vsel %vm700_vm2, %v4767_v24, -inf  ;;  %v4779_v32 = vpop.f32.mrf.mxu1 }
 0x209   : > { %v2058_v51 = vrot.slane %v2057_v55, 4  ;;  %v2072_v53 = vrot.slane %v2071_v2, 4  ;;  %v1822_v52 = vmax.f32 %v1790_v44, 0.0  ;;  %v1821_v16 = vmax.f32 %v1789_v43, 0.0 }
 0x20a   : > { %v2080_v3 = vmax.f32 %v2078_v6, %v2079_v56  ;;  %v1516_v63 = vcombine.high %v1500_v62, %v1500_v62  ;;  %v4784_v1 = vpop.f32.mrf.mxu1  ;;  %v1792_v44 = vadd.f32 %v3849_v48, %v1680_v57  ;;  %v4802_v57 = vpop.permute.xlu0 %1902  ;;  %v5624_v45 = vrot.slane %v4727_v49, 2 }
 0x20b   : > { %v2059_v47 = vmax.f32 %v2057_v55, %v2058_v51  ;;  %v2073_v35 = vmax.f32 %v2071_v2, %v2072_v53  ;;  %v4787_v26 = vmul.f32 %v4637_v30, %v1822_v52  ;;  %v4790_v21 = vmul.f32 %v4604_v29, %v1821_v16  ;;  %v4797_v53 = vpop.permute.xlu1 %1898  ;;  %5622 = vst [vmem:[#allocation27_spill] sm:$0xff] %v4802_v57 }
 0x20c   : > { %v2068_v55 = vmax.f32 %v2066_v4, %v2067_v20  ;;  %v2081_v51 = vrot.slane %v2080_v3, 2  ;;  %v1676_v43 = vrot.slane %v1516_v63, %v4612_v40  ;;  %5621 = vst [vmem:[#allocation26_spill] sm:$0xff] %v4797_v53  ;;  %v2034_v52 = vrot.slane %v4745_v14, 1  ;;  %v4800_v4 = vpop.f32.mrf.mxu1 }
 0x20d   : > { %v2060_v17 = vrot.slane %v2059_v47, 2  ;;  %5619 = vst [vmem:[#allocation24_spill] sm:$0xff] %v4787_v26  ;;  %5620 = vst [vmem:[#allocation25_spill] sm:$0xff] %v4790_v21  ;;  %v2074_v39 = vrot.slane %v2073_v35, 2  ;;  %v2092_v62 = vsel %vm700_vm2, %v4787_v26, -inf  ;;  %v2085_v31 = vsel %vm700_vm2, %v4790_v21, -inf }
 0x20e   : > { %v2048_v2 = vrot.slane %v2047_v0, 1  ;;  %v2093_v16 = vrot.slane %v2092_v62, 4  ;;  %v2086_v6 = vrot.slane %v2085_v31, 4  ;;  %v2082_v48 = vmax.f32 %v2080_v3, %v2081_v51 }
 0x20f   : > { %v2061_v22 = vmax.f32 %v2059_v47, %v2060_v17  ;;  %v2075_v20 = vmax.f32 %v2073_v35, %v2074_v39  ;;  %v1824_v56 = vmax.f32 %v1792_v44, 0.0  ;;  %v1791_v47 = vadd.f32 %v1676_v43, %v1328_v7  ;;  %v4815_v39 = vpop.f32.mrf.mxu1 }
 0x210   : > { %v2094_v17 = vmax.f32 %v2092_v62, %v2093_v16  ;;  %v2087_v29 = vmax.f32 %v2085_v31, %v2086_v6  ;;  %v5623_v30 = vcombine.high %v4645_v10, %v4645_v10  ;;  %v2054_v26 = vmax.f32 %v4727_v49, %v5624_v45  ;;  %v4823_v49 = vpop.permute.xlu1 %1946 }
 0x211   : > { %v2062_v63 = vrot.slane %v2061_v22, 1  ;;  %v2069_v21 = vrot.slane %v2068_v55, 1  ;;  %v4812_v3 = vmul.f32 %v4802_v57, %v1824_v56  ;;  %v1823_v35 = vmax.f32 %v1791_v47, 0.0 }
 0x212   : > { %v1556_v33 = vrot.slane %v5623_v30, %v4602_v58  ;;  %v2076_v7 = vrot.slane %v2075_v20, 1  ;;  %v2095_v51 = vrot.slane %v2094_v17, 2  ;;  %v2088_v44 = vrot.slane %v2087_v29, 2 }
 0x213   : > { %5625 = vst [vmem:[#allocation28_spill] sm:$0xff] %v4812_v3  ;;  %v2035_v62 = vmax.f32 %v4745_v14, %v2034_v52  ;;  %v2049_v31 = vmax.f32 %v2047_v0, %v2048_v2  ;;  %v2106_v30 = vsel %vm700_vm2, %v4812_v3, -inf  ;;  %v4821_v45 = vmul.f32 %v4797_v53, %v1823_v35  ;;  %v4830_v53 = vpop.f32.mrf.mxu1 }
 0x214   : > { %v1688_v43 = vrot.slane %v1556_v33, %v4612_v40  ;;  %v2063_v16 = vmax.f32 %v2061_v22, %v2062_v63  ;;  %v2083_v6 = vrot.slane %v2082_v48, 1  ;;  %v2107_v56 = vrot.slane %v2106_v30, 4 }
 0x215   : > { %5626 = vst [vmem:[#allocation29_spill] sm:$0xff] %v4821_v45  ;;  %v2070_v57 = vmax.f32 %v2068_v55, %v2069_v21  ;;  %v2099_v61 = vsel %vm700_vm2, %v4821_v45, -inf  ;;  %v1542_v0 = vrot.slane %v4645_v10, %v4602_v58  ;;  %v1566_v14 = vcombine.high %v1556_v33, %v1556_v33 }
 0x216   : > { %v1794_v47 = vadd.f32 %v4769_v12, %v1688_v43  ;;  %v2077_v52 = vmax.f32 %v2075_v20, %v2076_v7  ;;  %v2096_v2 = vmax.f32 %v2094_v17, %v2095_v51  ;;  %v2089_v3 = vmax.f32 %v2087_v29, %v2088_v44  ;;  %v4840_v20 = vpop.permute.xlu1 %1922 }
 0x217   : > { %v2108_v35 = vmax.f32 %v2106_v30, %v2107_v56  ;;  %v2100_v24 = vrot.slane %v2099_v61, 4  ;;  %v1684_v63 = vrot.slane %v1542_v0, %v4612_v40  ;;  %v1696_v12 = vrot.slane %v1566_v14, %v4612_v40  ;;  %5627 = vst [vmem:[#allocation30_spill] sm:$0xff] %v4840_v20  ;;  %v4843_v30 = vpop.f32.mrf.mxu1 }
 0x218   : > { %v1826_v22 = vmax.f32 %v1794_v47, 0.0  ;;  %v2273_v21 = vsel %vm966_vm3, %v2070_v57, %v2063_v16  ;;  %v2084_v55 = vmax.f32 %v2082_v48, %v2083_v6  ;;  %v2055_v45 = vrot.slane %v2054_v26, 1 }
 0x219   : > { %v2109_v43 = vrot.slane %v2108_v35, 2  ;;  %v2101_v11 = vmax.f32 %v2099_v61, %v2100_v24  ;;  %v1793_v29 = vadd.f32 %v1684_v63, %v4779_v32  ;;  %v1796_v10 = vadd.f32 %v4784_v1, %v1696_v12 }
 0x21a   : > { %v4836_v33 = vmul.f32 %v4610_v36, %v1826_v22  ;;  %v2274_v17 = vsel %vm968_vm4, %v2077_v52, %v2273_v21  ;;  %v2097_v7 = vrot.slane %v2096_v2, 1  ;;  %v2090_v51 = vrot.slane %v2089_v3, 1  ;;  %v4867_v12 = vpop.permute.xlu1 %1926 }
 0x21b   : > { %v2110_v44 = vmax.f32 %v2108_v35, %v2109_v43  ;;  %v1825_v61 = vmax.f32 %v1793_v29, 0.0  ;;  %v1828_v24 = vmax.f32 %v1796_v10, 0.0  ;;  %v2268_v32 = vsel %vm970_vm5, %v4738_v23, %v4754_v38  ;;  %v1368_v38 = vpop.f32.mrf.mxu1  ;;  %5628 = vst [vmem:[#allocation31_spill] sm:$0xff] %v4867_v12 }
 0x21c   : > { %v2120_v48 = vsel %vm700_vm2, %v4836_v33, -inf  ;;  %v2102_v57 = vrot.slane %v2101_v11, 2  ;;  %v2056_v1 = vmax.f32 %v2054_v26, %v2055_v45  ;;  %v2269_v16 = vsel %vm972_vm6, %v2035_v62, %v2268_v32 }
 0x21d   : > { %v1564_v6 = vcombine.high %v1542_v0, %v1542_v0  ;;  %v2121_v56 = vrot.slane %v2120_v48, 4  ;;  %v4852_v47 = vmul.f32 %v4687_v15, %v1825_v61  ;;  %v4855_v14 = vmul.f32 %v4781_v9, %v1828_v24  ;;  %v3864_v24 = vpop.f32.mrf.mxu1 }
 0x21e   : > { %v2270_v52 = vsel %vm974_vm7, %v4775_v46, %v2269_v16  ;;  %v2091_v35 = vmax.f32 %v2089_v3, %v2090_v51  ;;  %v2275_v22 = vsel %vm970_vm5, %v2084_v55, %v2274_v17  ;;  %v2111_v62 = vrot.slane %v2110_v44, 1 }
 0x21f   : > { %v2271_v23 = vsel %vm976_vm8, %v2049_v31, %v2270_v52  ;;  %v1692_v26 = vrot.slane %v1564_v6, %v4612_v40  ;;  %v2113_v45 = vsel %vm700_vm2, %v4852_v47, -inf  ;;  %v2134_v0 = vsel %vm700_vm2, %v4855_v14, -inf }
 0x220   : > { %v2272_v63 = vsel %vm978_vm9, %v2056_v1, %v2271_v23  ;;  %v2103_v46 = vmax.f32 %v2101_v11, %v2102_v57  ;;  %v2114_v3 = vrot.slane %v2113_v45, 4  ;;  %v2135_v21 = vrot.slane %v2134_v0, 4 }
 0x221   : > { %3878 = vmatprep.mubr.msk.f32.mxu0 %vm700_vm2, %v2272_v63  ;;  %v1795_v31 = vadd.f32 %v1692_v26, %v4800_v4  ;;  %v4871_v55 = vmax.f32 %v2096_v2, %v2097_v7  ;;  %v2122_v43 = vmax.f32 %v2120_v48, %v2121_v56  ;;  %v1535_v29 = vcombine.high %v4719_v37, %v4719_v37 }
 0x222   : > { %v1549_v10 = vrot.slane %v4719_v37, %v4602_v58  ;;  %v2115_v17 = vmax.f32 %v2113_v45, %v2114_v3  ;;  %v2136_v51 = vmax.f32 %v2134_v0, %v2135_v21  ;;  %v5629_v11 = vcombine.high %v4629_v13, %v4629_v13  ;;  %v1378_v45 = vpop.f32.mrf.mxu1 }
 0x223   : > { %v1827_v61 = vmax.f32 %v1795_v31, 0.0  ;;  %v4884_v4 = vsel %vm972_vm6, %v2091_v35, %v2275_v22  ;;  %v1563_v2 = vrot.slane %v1535_v29, %v4602_v58  ;;  %v4888_v57 = vmax.f32 %v2110_v44, %v2111_v62  ;;  %v4895_v35 = vpop.permute.xlu1 %1930 }
 0x224   : > { %v4881_v32 = vrot.slane %v5629_v11, %v4602_v58  ;;  %v1700_v7 = vrot.slane %v1549_v10, %v4612_v40  ;;  %v1565_v48 = vcombine.high %v1549_v10, %v1549_v10  ;;  %v2104_v37 = vrot.slane %v2103_v46, 1  ;;  %5630 = vst [vmem:[#allocation32_spill] sm:$0xff] %v4895_v35 }
 0x225   : > { %v2116_v1 = vrot.slane %v2115_v17, 2  ;;  %v4891_v16 = vmul.f32 %v4743_v42, %v1827_v61  ;;  %v2123_v6 = vrot.slane %v2122_v43, 2  ;;  %v1704_v56 = vrot.slane %v1563_v2, %v4612_v40 }
 0x226   : > { %v1797_v52 = vadd.f32 %v1700_v7, %v4830_v53  ;;  %v1567_v23 = vcombine.high %v1563_v2, %v1563_v2  ;;  %v2137_v22 = vrot.slane %v2136_v51, 2  ;;  %v1708_v44 = vrot.slane %v1565_v48, %v4612_v40 }
 0x227   : > { %v2127_v26 = vsel %vm700_vm2, %v4891_v16, -inf  ;;  %v1720_v62 = vrot.slane %v4881_v32, %v4612_v40  ;;  %v1798_v63 = vadd.f32 %v4815_v39, %v1704_v56  ;;  %v4904_v53 = vmax.f32 %v2103_v46, %v2104_v37  ;;  %v3867_v39 = vpop.f32.mrf.mxu1 }
 0x228   : > { %v2128_v0 = vrot.slane %v2127_v26, 4  ;;  %v1829_v3 = vmax.f32 %v1797_v52, 0.0  ;;  %v1712_v21 = vrot.slane %v1567_v23, %v4612_v40  ;;  %v2117_v31 = vmax.f32 %v2115_v17, %v2116_v1  ;;  %v4915_v17 = vpop.permute.xlu1 %1934 }
 0x229   : > { %v1799_v29 = vadd.f32 %v1708_v44, %v1368_v38  ;;  %v1802_v10 = vadd.f32 %v3864_v24, %v1720_v62  ;;  %v1830_v11 = vmax.f32 %v1798_v63, 0.0  ;;  %v2124_v48 = vmax.f32 %v2122_v43, %v2123_v6  ;;  %5631 = vst [vmem:[#allocation33_spill] sm:$0xff] %v4915_v17  ;;  %v4932_v62 = vpop.f32.mrf.mxu1 }
 0x22a   : > { %v2129_v61 = vmax.f32 %v2127_v26, %v2128_v0  ;;  %v4907_v2 = vmul.f32 %v4840_v20, %v1829_v3  ;;  %v1800_v7 = vadd.f32 %v4843_v30, %v1712_v21  ;;  %v2138_v42 = vmax.f32 %v2136_v51, %v2137_v22 }
 0x22b   : > { %v1831_v9 = vmax.f32 %v1799_v29, 0.0  ;;  %v1834_v15 = vmax.f32 %v1802_v10, 0.0  ;;  %v4911_v52 = vmul.f32 %v4867_v12, %v1830_v11  ;;  %v2118_v24 = vrot.slane %v2117_v31, 1 }
 0x22c   : > { %v2130_v56 = vrot.slane %v2129_v61, 2  ;;  %v2141_v38 = vsel %vm700_vm2, %v4907_v2, -inf  ;;  %v1832_v46 = vmax.f32 %v1800_v7, 0.0  ;;  %v1591_v23 = vrot.slane %v4629_v13, %v4602_v58 }
 0x22d   : > { %v2142_v37 = vrot.slane %v2141_v38, 4  ;;  %v4918_v1 = vmul.f32 %v4895_v35, %v1831_v9  ;;  %v4921_v30 = vmul.f32 %v4773_v59, %v1834_v15  ;;  %v2148_v51 = vsel %vm700_vm2, %v4911_v52, -inf  ;;  %v4941_v35 = vpop.f32.mrf.mxu1 }
 0x22e   : > { %v2131_v43 = vmax.f32 %v2129_v61, %v2130_v56  ;;  %v4926_v6 = vmul.f32 %v4915_v17, %v1832_v46  ;;  %v2125_v22 = vrot.slane %v2124_v48, 1  ;;  %v2149_v26 = vrot.slane %v2148_v51, 4  ;;  %v4943_v17 = vpop.permute.xlu0 %1950 }
 0x22f   : > { %5632 = vst [vmem:[#allocation34_spill] sm:$0xff] %v4921_v30  ;;  %v2143_v44 = vmax.f32 %v2141_v38, %v2142_v37  ;;  %v2155_v9 = vsel %vm700_vm2, %v4918_v1, -inf  ;;  %v2176_v3 = vsel %vm700_vm2, %v4921_v30, -inf  ;;  %v1716_v13 = vrot.slane %v1591_v23, %v4612_v40 }
 0x230   : > { %5633 = vst [vmem:[#allocation35_spill] sm:$0xff] %v4926_v6  ;;  %v2132_v15 = vrot.slane %v2131_v43, 1  ;;  %v2162_v0 = vsel %vm700_vm2, %v4926_v6, -inf  ;;  %v2156_v63 = vrot.slane %v2155_v9, 4  ;;  %v2150_v21 = vmax.f32 %v2148_v51, %v2149_v26 }
 0x231   : > { %v2144_v29 = vrot.slane %v2143_v44, 2  ;;  %v2163_v10 = vrot.slane %v2162_v0, 4  ;;  %v2119_v61 = vmax.f32 %v2117_v31, %v2118_v24  ;;  %v2139_v11 = vrot.slane %v2138_v42, 1 }
 0x232   : > { %v2157_v7 = vmax.f32 %v2155_v9, %v2156_v63  ;;  %v1615_v56 = vcombine.high %v4881_v32, %v4881_v32  ;;  %v2151_v38 = vrot.slane %v2150_v21, 2  ;;  %v1801_v59 = vadd.f32 %v1716_v13, %v1378_v45 }
 0x233   : > { %v2145_v46 = vmax.f32 %v2143_v44, %v2144_v29  ;;  %v2164_v37 = vmax.f32 %v2162_v0, %v2163_v10  ;;  %v2126_v20 = vmax.f32 %v2124_v48, %v2125_v22  ;;  %v2177_v26 = vrot.slane %v2176_v3, 4  ;;  %v1398_v22 = vpop.f32.mrf.mxu1 }
 0x234   : > { %v2158_v51 = vrot.slane %v2157_v7, 2  ;;  %v1728_v12 = vrot.slane %v1615_v56, %v4612_v40  ;;  %v2133_v36 = vmax.f32 %v2131_v43, %v2132_v15  ;;  %v2152_v31 = vmax.f32 %v2150_v21, %v2151_v38 }
 0x235   : > { %v2165_v24 = vrot.slane %v2164_v37, 2  ;;  %v1833_v9 = vmax.f32 %v1801_v59, 0.0  ;;  %v2140_v63 = vmax.f32 %v2138_v42, %v2139_v11  ;;  %v2146_v30 = vrot.slane %v2145_v46, 1  ;;  %v3873_v13 = vpop.f32.mrf.mxu1 }
 0x236   : > { %v2159_v32 = vmax.f32 %v2157_v7, %v2158_v51  ;;  %v1804_v6 = vadd.f32 %v3867_v39, %v1728_v12  ;;  %v2280_v44 = vsel %vm966_vm3, %v2126_v20, %v2119_v61  ;;  %v2153_v45 = vrot.slane %v2152_v31, 1 }
 0x237   : > { %v4948_v0 = vmul.f32 %v4668_v18, %v1833_v9  ;;  %v2277_v48 = vsel %vm974_vm7, %v4871_v55, %v4884_v4  ;;  %v2166_v29 = vmax.f32 %v2164_v37, %v2165_v24  ;;  %v2178_v43 = vmax.f32 %v2176_v3, %v2177_v26  ;;  %v2387_v55 = vld [vmem:[%s5451_s5] sm:$0xff]  ;;  %v4963_v4 = vpop.permute.xlu0 %1954 }
 0x238   : > { %v1836_v15 = vmax.f32 %v1804_v6, 0.0  ;;  %v2278_v42 = vsel %vm976_vm8, %v4904_v53, %v2277_v48  ;;  %v2281_v59 = vsel %vm968_vm4, %v2133_v36, %v2280_v44  ;;  %v1613_v39 = vcombine.high %v1591_v23, %v1591_v23 }
 0x239   : > { %v2169_v20 = vsel %vm700_vm2, %v4948_v0, -inf  ;;  %v2279_v12 = vsel %vm978_vm9, %v4888_v57, %v2278_v42  ;;  %v2147_v3 = vmax.f32 %v2145_v46, %v2146_v30  ;;  %v2160_v6 = vrot.slane %v2159_v32, 1 }
 0x23a   : > { %v2170_v21 = vrot.slane %v2169_v20, 4  ;;  %v4966_v53 = vmul.f32 %v4943_v17, %v1836_v15  ;;  %3879 = vmatmul.mubr.msk.f32.vlgmr.msra.gmra.mxu0 %vm700_vm2, %v2279_v12  ;;  %v2154_v36 = vmax.f32 %v2152_v31, %v2153_v45  ;;  %v1724_v10 = vrot.slane %v1613_v39, %v4612_v40 }
 0x23b   : > { %v1584_v57 = vcombine.high %v4649_v19, %v4649_v19  ;;  %v1598_v23 = vrot.slane %v4649_v19, %v4602_v58  ;;  %3885 = vmatpush3.msra.mxu0 %v4590_v8  ;;  %v2167_v11 = vrot.slane %v2166_v29, 1  ;;  %v2282_v7 = vsel %vm970_vm5, %v2140_v63, %v2281_v59  ;;  %v1408_v63 = vpop.f32.mrf.mxu1  ;;  %v4983_v45 = vpop.permute.xlu0 %1958 }
 0x23c   : > { %v2171_v30 = vmax.f32 %v2169_v20, %v2170_v21  ;;  %v2190_v61 = vsel %vm700_vm2, %v4966_v53, -inf  ;;  %3886 = vmatprep.subr.mxu0 %v2387_v55  ;;  %v1803_v38 = vadd.f32 %v1724_v10, %v4932_v62  ;;  %v2161_v19 = vmax.f32 %v2159_v32, %v2160_v6 }
 0x23d   : > { %v2191_v56 = vrot.slane %v2190_v61, 4  ;;  %v1612_v46 = vrot.slane %v1584_v57, %v4602_v58  ;;  %v1732_v37 = vrot.slane %v1598_v23, %v4612_v40  ;;  %3887 = vmatpush3.msra.mxu0 %v2387_v55  ;;  %v1614_v26 = vcombine.high %v1598_v23, %v1598_v23 }
 0x23e   : > { %v2172_v51 = vrot.slane %v2171_v30, 2  ;;  %v2283_v8 = vsel %vm972_vm6, %v2147_v3, %v2282_v7  ;;  %v1835_v24 = vmax.f32 %v1803_v38, 0.0  ;;  %v2179_v48 = vrot.slane %v2178_v43, 2 }
 0x23f   : > { %v2192_v31 = vmax.f32 %v2190_v61, %v2191_v56  ;;  %v1736_v9 = vrot.slane %v1612_v46, %v4612_v40  ;;  %v1805_v44 = vadd.f32 %v1732_v37, %v1398_v22  ;;  %v1616_v62 = vcombine.high %v1612_v46, %v1612_v46  ;;  %v5004_v7 = vpop.permute.xlu0 %1962  ;;  %v5007_v37 = vpop.permute.xlu1 %1966 }
 0x240   : > { %v1740_v15 = vrot.slane %v1614_v26, %v4612_v40  ;;  %v2168_v42 = vmax.f32 %v2166_v29, %v2167_v11  ;;  %v4987_v59 = vmul.f32 %v4823_v49, %v1835_v24  ;;  %v2284_v12 = vsel %vm974_vm7, %v2154_v36, %v2283_v8 }
 0x241   : > { %v1806_v32 = vadd.f32 %v4941_v35, %v1736_v9  ;;  %v1837_v20 = vmax.f32 %v1805_v44, 0.0  ;;  %v2173_v39 = vmax.f32 %v2171_v30, %v2172_v51  ;;  %v1744_v55 = vrot.slane %v1616_v62, %v4612_v40 }
 0x242   : > { %v1807_v22 = vadd.f32 %v1740_v15, %v1408_v63  ;;  %v2285_v3 = vsel %vm976_vm8, %v2161_v19, %v2284_v12  ;;  %v2193_v6 = vrot.slane %v2192_v31, 2  ;;  %v2183_v21 = vsel %vm700_vm2, %v4987_v59, -inf }
 0x243   : > { %v1838_v10 = vmax.f32 %v1806_v32, 0.0  ;;  %v4996_v29 = vmul.f32 %v4963_v4, %v1837_v20  ;;  %v2184_v57 = vrot.slane %v2183_v21, 4  ;;  %v1808_v23 = vadd.f32 %v3873_v13, %v1744_v55 }
 0x244   : > { %v1839_v35 = vmax.f32 %v1807_v22, 0.0  ;;  %v2180_v61 = vmax.f32 %v2178_v43, %v2179_v48  ;;  %v2286_v11 = vsel %vm978_vm9, %v2168_v42, %v2285_v3  ;;  %v2174_v13 = vrot.slane %v2173_v39, 1 }
 0x245   : > { %v4999_v36 = vmul.f32 %v4983_v45, %v1838_v10  ;;  %v2197_v30 = vsel %vm700_vm2, %v4996_v29, -inf  ;;  %v2185_v56 = vmax.f32 %v2183_v21, %v2184_v57  ;;  %v1840_v46 = vmax.f32 %v1808_v23, 0.0  ;;  %3881 = vmatprep.mubr.msk.f32.mxu0 %vm700_vm2, %v2286_v11 }
 0x246   : > { %v2198_v38 = vrot.slane %v2197_v30, 4  ;;  %v2194_v19 = vmax.f32 %v2192_v31, %v2193_v6  ;;  %v5012_v51 = vmul.f32 %v5004_v7, %v1839_v35  ;;  %v2181_v44 = vrot.slane %v2180_v61, 1 }
 0x247   : > { %v2204_v43 = vsel %vm700_vm2, %v4999_v36, -inf  ;;  %v2186_v26 = vrot.slane %v2185_v56, 2  ;;  %v5015_v9 = vmul.f32 %v5007_v37, %v1840_v46  ;;  %v2175_v42 = vmax.f32 %v2173_v39, %v2174_v13 }
 0x248   : > { %v2205_v8 = vrot.slane %v2204_v43, 4  ;;  %v2199_v24 = vmax.f32 %v2197_v30, %v2198_v38  ;;  %v2211_v63 = vsel %vm700_vm2, %v5012_v51, -inf  ;;  %v2195_v12 = vrot.slane %v2194_v19, 1 }
 0x249   : > { %v2187_v48 = vmax.f32 %v2185_v56, %v2186_v26  ;;  %v2218_v31 = vsel %vm700_vm2, %v5015_v9, -inf  ;;  %v2212_v20 = vrot.slane %v2211_v63, 4  ;;  %v2182_v6 = vmax.f32 %v2180_v61, %v2181_v44 }
 0x24a   : > { %v2206_v62 = vmax.f32 %v2204_v43, %v2205_v8  ;;  %v2200_v15 = vrot.slane %v2199_v24, 2  ;;  %v2219_v32 = vrot.slane %v2218_v31, 4  ;;  %v2196_v38 = vmax.f32 %v2194_v19, %v2195_v12 }
 0x24b   : > { %v2188_v55 = vrot.slane %v2187_v48, 1  ;;  %v2213_v10 = vmax.f32 %v2211_v63, %v2212_v20  ;;  %v2287_v30 = vsel %vm966_vm3, %v2182_v6, %v2175_v42 }
 0x24c   : > { %v2207_v22 = vrot.slane %v2206_v62, 2  ;;  %v2201_v3 = vmax.f32 %v2199_v24, %v2200_v15  ;;  %v2220_v21 = vmax.f32 %v2218_v31, %v2219_v32 }
 0x24d   : > { %v2189_v57 = vmax.f32 %v2187_v48, %v2188_v55  ;;  %v2214_v56 = vrot.slane %v2213_v10, 2 }
 0x24e   : > { %v2208_v23 = vmax.f32 %v2206_v62, %v2207_v22  ;;  %v2202_v35 = vrot.slane %v2201_v3, 1  ;;  %v2221_v11 = vrot.slane %v2220_v21, 2 }
 0x24f   : > { %v2288_v46 = vsel %vm968_vm4, %v2189_v57, %v2287_v30  ;;  %v2215_v26 = vmax.f32 %v2213_v10, %v2214_v56 }
 0x250   : > { %v2209_v39 = vrot.slane %v2208_v23, 1  ;;  %v2203_v13 = vmax.f32 %v2201_v3, %v2202_v35  ;;  %v2222_v43 = vmax.f32 %v2220_v21, %v2221_v11  ;;  %v2289_v8 = vsel %vm970_vm5, %v2196_v38, %v2288_v46 }
 0x251   : > { %v2216_v24 = vrot.slane %v2215_v26, 1 }
 0x252   : > { %v2223_v61 = vrot.slane %v2222_v43, 1  ;;  %v2290_v44 = vsel %vm972_vm6, %v2203_v13, %v2289_v8  ;;  %v2210_v63 = vmax.f32 %v2208_v23, %v2209_v39 }
 0x253   : > { %v2217_v48 = vmax.f32 %v2215_v26, %v2216_v24 }
 0x254   : > { %v2224_v62 = vmax.f32 %v2222_v43, %v2223_v61  ;;  %v2291_v15 = vsel %vm974_vm7, %v2210_v63, %v2290_v44 }
 0x255   : > { %v2292_v31 = vsel %vm976_vm8, %v2217_v48, %v2291_v15 }
 0x256   : > { %v2293_v19 = vsel %vm978_vm9, %v2224_v62, %v2292_v31 }
 0x257   : > { %3882 = vmatmul.mubr.msk.f32.gmra.mxu0 %vm700_vm2, %v2293_v19 }
 0x258   : > { %3888 = vmatprep.mubr.msk.f32.mxu0 %vm700_vm2, %v4655_v25  ;;  %v5634_v25 = vld [vmem:[#allocation18_spill] sm:$0xff] }
 0x25b   : > { %3889 = vmatmul.mubr.msk.f32.vlgmr.msra.gmra.mxu0 %vm700_vm2, %v4664_v41  ;;  %v5635_v41 = vld [vmem:[#allocation21_spill] sm:$0xff] }
 0x25c   : > { %3891 = vmatprep.mubr.msk.f32.mxu0 %vm700_vm2, %v4676_v34  ;;  %v5636_v34 = vld [vmem:[#allocation20_spill] sm:$0xff] }
 0x25f   : > { %3892 = vmatmul.mubr.msk.f32.gmra.mxu0 %vm700_vm2, %v4679_v60  ;;  %v5637_v60 = vld [vmem:[#allocation25_spill] sm:$0xff] }
 0x260   : > { %3894 = vmatprep.mubr.msk.f32.mxu0 %vm700_vm2, %v4694_v28  ;;  %v5639_v28 = vld [vmem:[#allocation29_spill] sm:$0xff] }
 0x263   : > { %3895 = vmatmul.mubr.msk.f32.gmra.mxu0 %vm700_vm2, %v4685_v50  ;;  %v5638_v50 = vld [vmem:[#allocation24_spill] sm:$0xff] }
 0x264   : > { %3897 = vmatprep.mubr.msk.f32.mxu0 %vm700_vm2, %v4710_v54  ;;  %v5641_v54 = vld [vmem:[#allocation35_spill] sm:$0xff] }
 0x267   : > { %3898 = vmatmul.mubr.msk.f32.gmra.mxu0 %vm700_vm2, %v4701_v5  ;;  %v5640_v5 = vld [vmem:[#allocation28_spill] sm:$0xff] }
 0x268   : > { %3900 = vmatprep.mubr.msk.f32.mxu0 %vm700_vm2, %v4757_v27  ;;  %v5642_v27 = vld [vmem:[#allocation34_spill] sm:$0xff] }
 0x26b   : > { %3901 = vmatmul.mubr.msk.f32.gmra.mxu0 %vm700_vm2, %v5634_v25 }
 0x26c   : > { %3903 = vmatprep.mubr.msk.f32.mxu0 %vm700_vm2, %v5635_v41 }
 0x26f   : > { %3904 = vmatmul.mubr.msk.f32.gmra.mxu0 %vm700_vm2, %v5636_v34 }
 0x270   : > { %3906 = vmatprep.mubr.msk.f32.mxu0 %vm700_vm2, %v5637_v60 }
 0x273   : > { %3907 = vmatmul.mubr.msk.f32.gmra.mxu0 %vm700_vm2, %v5638_v50 }
 0x274   : > { %3909 = vmatprep.mubr.msk.f32.mxu0 %vm700_vm2, %v5639_v28 }
 0x277   : > { %3910 = vmatmul.mubr.msk.f32.gmra.mxu0 %vm700_vm2, %v5640_v5 }
 0x278   : > { %3912 = vmatprep.mubr.msk.f32.mxu0 %vm700_vm2, %v4852_v47  ;;  %v3610_v47 = vld [vmem:[%s5453_s7] ss:$0 sm:$0xff] }
 0x27b   : > { %3913 = vmatmul.mubr.msk.f32.gmra.mxu0 %vm700_vm2, %v4836_v33 }
 0x27c   : > { %3915 = vmatprep.mubr.msk.f32.mxu0 %vm700_vm2, %v4891_v16 }
 0x27f   : > { %3916 = vmatmul.mubr.msk.f32.gmra.mxu0 %vm700_vm2, %v4855_v14 }
 0x280   : > { %3918 = vmatprep.mubr.msk.f32.mxu0 %vm700_vm2, %v4907_v2 }
 0x283   : > { %3919 = vmatmul.mubr.msk.f32.gmra.mxu0 %vm700_vm2, %v4911_v52 }
 0x284   : > { %3921 = vmatprep.mubr.msk.f32.mxu0 %vm700_vm2, %v4918_v1 }
 0x287   : > { %3922 = vmatmul.mubr.msk.f32.gmra.mxu0 %vm700_vm2, %v5641_v54 }
 0x288   : > { %3924 = vmatprep.mubr.msk.f32.mxu0 %vm700_vm2, %v4948_v0 }
 0x28b   : > { %3925 = vmatmul.mubr.msk.f32.gmra.mxu0 %vm700_vm2, %v5642_v27 }
 0x28c   : > { %3927 = vmatprep.mubr.msk.f32.mxu0 %vm700_vm2, %v4987_v59 }
 0x28f   : > { %3928 = vmatmul.mubr.msk.f32.gmra.mxu0 %vm700_vm2, %v4966_v53 }
 0x290   : > { %3930 = vmatprep.mubr.msk.f32.mxu0 %vm700_vm2, %v4996_v29 }
 0x293   : > { %3931 = vmatmul.mubr.msk.f32.gmra.mxu0 %vm700_vm2, %v4999_v36 }
 0x294   : > { %3933 = vmatprep.mubr.msk.f32.mxu0 %vm700_vm2, %v5012_v51 }
 0x297   : > { %3934 = vmatmul.mubr.msk.f32.gmra.mxu0 %vm700_vm2, %v5015_v9 }
 0x2fa   : > { %v3880_v33 = vpop.f32.mrf.mxu0 }
 0x2fb   : > { %v2374_v16 = vadd.f32 %v3880_v33, %v3610_v47 }
 0x2fc   : > { %v2368_v14 = vpop.f32.mrf.mxu0 }
 0x2fd   : > { %v2369_v2 = vadd.f32 %v3610_v47, %v2368_v14  ;;  %v2770_v52 = vrot.slane %v2374_v16, %v4602_v58  ;;  %v2763_v53 = vcombine.high %v2374_v16, %v2374_v16 }
 0x2ff   : > { %v2714_v1 = vcombine.high %v2369_v2, %v2369_v2  ;;  %v2721_v0 = vrot.slane %v2369_v2, %v4602_v58  ;;  %v2778_v59 = vcombine.high %v2770_v52, %v2770_v52  ;;  %v2777_v51 = vrot.slane %v2763_v53, %v4602_v58 }
 0x300   : > { %v5101_v9 = vrot.slane %v2770_v52, %v4602_v58 }
 0x301   : > { %v2728_v29 = vrot.slane %v2714_v1, %v4602_v58  ;;  %v2729_v36 = vcombine.high %v2721_v0, %v2721_v0  ;;  %v2737_v42 = vrot.slane %v2721_v0, %v4602_v58  ;;  %v5105_v32 = vrot.slane %v2778_v59, %v4602_v58 }
 0x302   : > { %v2779_v55 = vcombine.high %v2777_v51, %v2777_v51  ;;  %v2808_v22 = vcombine.high %v5101_v9, %v5101_v9  ;;  %v2945_v30 = vrot.slane %v5101_v9, %v4612_v40  ;;  %v5125_v56 = vrot.slane %v2777_v51, %v4602_v58 }
 0x303   : > { %v2751_v20 = vrot.slane %v2729_v36, %v4602_v58  ;;  %v2730_v12 = vcombine.high %v2728_v29, %v2728_v29  ;;  %v2759_v3 = vcombine.high %v2737_v42, %v2737_v42  ;;  %v5111_v6 = vrot.slane %v2728_v29, %v4602_v58 }
 0x304   : > { %v2810_v21 = vcombine.high %v5105_v32, %v5105_v32  ;;  %v2913_v35 = vrot.slane %v2737_v42, %v4612_v40  ;;  %v5122_v11 = vrot.slane %v2779_v55, %v4602_v58  ;;  %v2949_v39 = vrot.slane %v5105_v32, %v4612_v40 }
 0x305   : > { %v2761_v10 = vcombine.high %v2751_v20, %v2751_v20  ;;  %v5116_v57 = vrot.slane %v2730_v12, %v4602_v58  ;;  %v2917_v46 = vrot.slane %v2751_v20, %v4612_v40  ;;  %v5131_v13 = vrot.slane %v2808_v22, %v4612_v40  ;;  %v5643_v12 = vld [vmem:[#allocation2_spill] sm:$0xff] }
 0x306   : > { %v2921_v26 = vrot.slane %v2759_v3, %v4612_v40  ;;  %v2929_v8 = vrot.slane %v5111_v6, %v4612_v40  ;;  %v2760_v24 = vcombine.high %v5111_v6, %v5111_v6  ;;  %v5139_v61 = vrot.slane %v2810_v21, %v4612_v40 }
 0x307   : > { %v2925_v48 = vrot.slane %v2761_v10, %v4612_v40  ;;  %v2762_v62 = vcombine.high %v5116_v57, %v5116_v57  ;;  %v2933_v31 = vrot.slane %v5116_v57, %v4612_v40  ;;  %v2961_v19 = vrot.slane %v5125_v56, %v4612_v40  ;;  %v5644_v10 = vld [vmem:[#allocation3_spill] sm:$0xff] }
 0x308   : > { %v2811_v25 = vcombine.high %v5122_v11, %v5122_v11  ;;  %v2809_v41 = vcombine.high %v5125_v56, %v5125_v56  ;;  %v2937_v27 = vrot.slane %v2760_v24, %v4612_v40  ;;  %v2965_v33 = vrot.slane %v5122_v11, %v4612_v40 }
 0x309   : > { %v2941_v2 = vrot.slane %v2762_v62, %v4612_v40 }
 0x30a   : > { %v5168_v59 = vrot.slane %v2811_v25, %v4612_v40  ;;  %v5171_v29 = vrot.slane %v2809_v41, %v4612_v40 }
 0x317   : > { %v3883_v23 = vpop.f32.mrf.mxu0 }
 0x318   : > { %v2384_v38 = vadd.f32 %v3883_v23, %v3610_v47 }
 0x319   : > { %v2378_v43 = vpop.f32.mrf.mxu0 }
 0x31a   : > { %v2868_v44 = vrot.slane %v2384_v38, %v4602_v58  ;;  %v2379_v63 = vadd.f32 %v3610_v47, %v2378_v43  ;;  %v2861_v34 = vcombine.high %v2384_v38, %v2384_v38 }
 0x31b   : > { %v3890_v15 = vpop.f32.mrf.mxu0 }
 0x31c   : > { %v2876_v60 = vcombine.high %v2868_v44, %v2868_v44  ;;  %v2812_v50 = vcombine.high %v2379_v63, %v2379_v63  ;;  %v2819_v28 = vrot.slane %v2379_v63, %v4602_v58  ;;  %v3071_v5 = vadd.f32 %v3890_v15, %v2917_v46 }
 0x31d   : > { %v2551_v54 = vpop.f32.mrf.mxu0  ;;  %v5158_v47 = vrot.slane %v2868_v44, %v4602_v58  ;;  %v5174_v36 = vrot.slane %v2861_v34, %v4602_v58 }
 0x31e   : > { %v2827_v14 = vcombine.high %v2819_v28, %v2819_v28  ;;  %v3070_v16 = vadd.f32 %v2913_v35, %v2551_v54  ;;  %v5162_v52 = vrot.slane %v2819_v28, %v4602_v58  ;;  %v5165_v1 = vrot.slane %v2812_v50, %v4602_v58 }
 0x31f   : > { %v3103_v0 = vmax.f32 %v3071_v5, 0.0  ;;  %v3893_v53 = vpop.f32.mrf.mxu0  ;;  %v5177_v20 = vrot.slane %v2876_v60, %v4602_v58 }
 0x320   : > { %v3102_v51 = vmax.f32 %v3070_v16, 0.0  ;;  %v3073_v42 = vadd.f32 %v3893_v53, %v2925_v48  ;;  %v5181_v3 = vrot.slane %v2827_v14, %v4602_v58  ;;  %v2977_v38 = vrot.slane %v5162_v52, %v4612_v40  ;;  %v5646_v14 = vld [vmem:[#allocation7_spill] sm:$0xff] }
 0x321   : > { %v3135_v55 = vmul.f32 %v3103_v0, %v5643_v12  ;;  %v2561_v22 = vpop.f32.mrf.mxu0  ;;  %v2857_v24 = vcombine.high %v5162_v52, %v5162_v52  ;;  %v2828_v44 = vcombine.high %v5165_v1, %v5165_v1  ;;  %v5197_v63 = vrot.slane %v5165_v1, %v4602_v58 }
 0x322   : > { %v3134_v57 = vmul.f32 %v3102_v51, %v5644_v10  ;;  %v3105_v23 = vmax.f32 %v3073_v42, 0.0  ;;  %v3072_v35 = vadd.f32 %v2921_v26, %v2561_v22  ;;  %v5645_v26 = vld [vmem:[#allocation11_spill] sm:$0xff]  ;;  %v2981_v50 = vrot.slane %v5181_v3, %v4612_v40 }
 0x323   : > { %v3173_v46 = vsel %vm700_vm2, %v3135_v55, -inf  ;;  %v3896_v43 = vpop.f32.mrf.mxu0  ;;  %v2859_v28 = vcombine.high %v5181_v3, %v5181_v3  ;;  %v5208_v12 = vrot.slane %v2857_v24, %v4612_v40 }
 0x324   : > { %v3174_v48 = vrot.slane %v3173_v46, 4  ;;  %v3166_v62 = vsel %vm700_vm2, %v3134_v57, -inf  ;;  %v3137_v15 = vmul.f32 %v3105_v23, %v5645_v26  ;;  %v3104_v25 = vmax.f32 %v3072_v35, 0.0 }
 0x325   : > { %v3167_v41 = vrot.slane %v3166_v62, 4  ;;  %v3075_v34 = vadd.f32 %v3896_v43, %v2933_v31  ;;  %v2571_v60 = vpop.f32.mrf.mxu0 }
 0x326   : > { %v3175_v5 = vmax.f32 %v3173_v46, %v3174_v48  ;;  %v3187_v54 = vsel %vm700_vm2, %v3137_v15, -inf  ;;  %v3136_v16 = vmul.f32 %v3104_v25, %v5646_v14  ;;  %v3074_v1 = vadd.f32 %v2929_v8, %v2571_v60  ;;  %v5647_v46 = vld [vmem:[#allocation15_spill] sm:$0xff]  ;;  %v5648_v8 = vld [vmem:[#allocation13_spill] sm:$0xff] }
 0x327   : > { %v3168_v0 = vmax.f32 %v3166_v62, %v3167_v41  ;;  %v3188_v53 = vrot.slane %v3187_v54, 4  ;;  %v3107_v51 = vmax.f32 %v3075_v34, 0.0  ;;  %v3899_v42 = vpop.f32.mrf.mxu0 }
 0x328   : > { %v3176_v31 = vrot.slane %v3175_v5, 2  ;;  %v3180_v55 = vsel %vm700_vm2, %v3136_v16, -inf  ;;  %v3106_v22 = vmax.f32 %v3074_v1, 0.0  ;;  %v3077_v10 = vadd.f32 %v3899_v42, %v2941_v2 }
 0x329   : > { %v3169_v57 = vrot.slane %v3168_v0, 2  ;;  %v3189_v23 = vmax.f32 %v3187_v54, %v3188_v53  ;;  %v3181_v35 = vrot.slane %v3180_v55, 4  ;;  %v3139_v43 = vmul.f32 %v3107_v51, %v5647_v46  ;;  %v2581_v48 = vpop.f32.mrf.mxu0  ;;  %v5649_v54 = vld [vmem:[#allocation16_spill] sm:$0xff] }
 0x32a   : > { %v3177_v26 = vmax.f32 %v3175_v5, %v3176_v31  ;;  %v3138_v62 = vmul.f32 %v3106_v22, %v5648_v8  ;;  %v3109_v15 = vmax.f32 %v3077_v10, 0.0  ;;  %v3076_v25 = vadd.f32 %v2937_v27, %v2581_v48 }
 0x32b   : > { %v3170_v41 = vmax.f32 %v3168_v0, %v3169_v57  ;;  %v3190_v34 = vrot.slane %v3189_v23, 2  ;;  %v3182_v24 = vmax.f32 %v3180_v55, %v3181_v35  ;;  %v3201_v60 = vsel %vm700_vm2, %v3139_v43, -inf  ;;  %v3902_v14 = vpop.f32.mrf.mxu0 }
 0x32c   : > { %v3178_v16 = vrot.slane %v3177_v26, 1  ;;  %v3202_v1 = vrot.slane %v3201_v60, 4  ;;  %v3194_v2 = vsel %vm700_vm2, %v3138_v62, -inf  ;;  %v3141_v53 = vmul.f32 %v3109_v15, %v5649_v54 }
 0x32d   : > { %v3171_v42 = vrot.slane %v3170_v41, 1  ;;  %v3191_v51 = vmax.f32 %v3189_v23, %v3190_v34  ;;  %v3183_v46 = vrot.slane %v3182_v24, 2  ;;  %v3195_v5 = vrot.slane %v3194_v2, 4  ;;  %v2591_v31 = vpop.f32.mrf.mxu0  ;;  %v5650_v23 = vld [vmem:[#allocation17_spill] sm:$0xff] }
 0x32e   : > { %v3203_v22 = vmax.f32 %v3201_v60, %v3202_v1  ;;  %v3215_v27 = vsel %vm700_vm2, %v3141_v53, -inf  ;;  %v3108_v0 = vmax.f32 %v3076_v25, 0.0  ;;  %v5218_v55 = vrot.slane %v2828_v44, %v4602_v58 }
 0x32f   : > { %v3172_v10 = vmax.f32 %v3170_v41, %v3171_v42  ;;  %v3184_v57 = vmax.f32 %v3182_v24, %v3183_v46  ;;  %v3196_v35 = vmax.f32 %v3194_v2, %v3195_v5  ;;  %v3905_v43 = vpop.f32.mrf.mxu0  ;;  %v5221_v48 = vrot.slane %v2859_v28, %v4612_v40 }
 0x330   : > { %v3204_v8 = vrot.slane %v3203_v22, 2  ;;  %v3216_v62 = vrot.slane %v3215_v27, 4  ;;  %v3140_v15 = vmul.f32 %v3108_v0, %v5650_v23  ;;  %v3079_v34 = vadd.f32 %v3902_v14, %v2949_v39  ;;  %v5651_v14 = vld [vmem:[#allocation5_spill] sm:$0xff] }
 0x331   : > { %v3179_v60 = vmax.f32 %v3177_v26, %v3178_v16  ;;  %v3192_v25 = vrot.slane %v3191_v51, 1  ;;  %v3185_v1 = vrot.slane %v3184_v57, 1  ;;  %v3197_v44 = vrot.slane %v3196_v35, 2  ;;  %v2601_v54 = vpop.f32.mrf.mxu0 }
 0x332   : > { %v3205_v41 = vmax.f32 %v3203_v22, %v3204_v8  ;;  %v5227_v24 = vmax.f32 %v3215_v27, %v3216_v62  ;;  %v3208_v2 = vsel %vm700_vm2, %v3140_v15, -inf  ;;  %v3111_v28 = vmax.f32 %v3079_v34, 0.0  ;;  %v5652_v15 = vld [vmem:[#allocation9_spill] sm:$0xff] }
 0x333   : > { %v5230_v53 = vmax.f32 %v3196_v35, %v3197_v44  ;;  %v3209_v42 = vrot.slane %v3208_v2, 4  ;;  %v3078_v46 = vadd.f32 %v2945_v30, %v2591_v31  ;;  %v3908_v32 = vpop.f32.mrf.mxu0  ;;  %v2997_v39 = vrot.slane %v5218_v55, %v4612_v40 }
 0x334   : > { %v5238_v26 = vsel %vm966_vm3, %v3179_v60, %v3172_v10  ;;  %v3143_v16 = vmul.f32 %v3111_v28, %v5651_v14  ;;  %v3081_v5 = vadd.f32 %v3905_v43, %v5139_v61  ;;  %v2993_v22 = vrot.slane %v5197_v63, %v4612_v40  ;;  %v5653_v60 = vld [vmem:[#allocation6_spill] sm:$0xff] }
 0x335   : > { %v5244_v27 = vmax.f32 %v3191_v51, %v3192_v25  ;;  %v3206_v0 = vrot.slane %v3205_v41, 1  ;;  %v3110_v35 = vmax.f32 %v3078_v46, 0.0  ;;  %v3080_v9 = vadd.f32 %v5131_v13, %v2601_v54  ;;  %v2611_v30 = vpop.f32.mrf.mxu0 }
 0x336   : > { %v5247_v31 = vmax.f32 %v3184_v57, %v3185_v1  ;;  %v3218_v8 = vrot.slane %v5227_v24, 2  ;;  %v3229_v10 = vsel %vm700_vm2, %v3143_v16, -inf  ;;  %v3113_v62 = vmax.f32 %v3081_v5, 0.0  ;;  %v5654_v16 = vld [vmem:[#allocation4_spill] sm:$0xff] }
 0x337   : > { %v3199_v23 = vrot.slane %v5230_v53, 1  ;;  %v3210_v61 = vmax.f32 %v3208_v2, %v3209_v42  ;;  %v3230_v43 = vrot.slane %v3229_v10, 4  ;;  %v3142_v34 = vmul.f32 %v3110_v35, %v5652_v15  ;;  %v3911_v51 = vpop.f32.mrf.mxu0  ;;  %v5656_v15 = vld [vmem:[#allocation8_spill] sm:$0xff] }
 0x338   : > { %v3145_v25 = vmul.f32 %v3113_v62, %v5653_v60  ;;  %v3112_v44 = vmax.f32 %v3080_v9, 0.0  ;;  %v3083_v13 = vadd.f32 %v3908_v32, %v2965_v33  ;;  %v3082_v57 = vadd.f32 %v2961_v19, %v2611_v30 }
 0x339   : > { %v5260_v1 = vmax.f32 %v3205_v41, %v3206_v0  ;;  %v3231_v54 = vmax.f32 %v3229_v10, %v3230_v43  ;;  %v3222_v2 = vsel %vm700_vm2, %v3142_v34, -inf  ;;  %v3085_v28 = vadd.f32 %v3911_v51, %v5168_v59  ;;  %v2621_v42 = vpop.f32.mrf.mxu0  ;;  %v5655_v0 = vld [vmem:[#allocation12_spill] sm:$0xff] }
 0x33a   : > { %v3223_v46 = vrot.slane %v3222_v2, 4  ;;  %v3243_v14 = vsel %vm700_vm2, %v3145_v25, -inf  ;;  %v3144_v5 = vmul.f32 %v3112_v44, %v5654_v16  ;;  %v3115_v35 = vmax.f32 %v3083_v13, 0.0  ;;  %v5657_v44 = vld [vmem:[#allocation27_spill] sm:$0xff] }
 0x33b   : > { %v3211_v11 = vrot.slane %v3210_v61, 2  ;;  %v3232_v33 = vrot.slane %v3231_v54, 2  ;;  %v3244_v32 = vrot.slane %v3243_v14, 4  ;;  %v3114_v9 = vmax.f32 %v3082_v57, 0.0  ;;  %v3914_v56 = vpop.f32.mrf.mxu0 }
 0x33c   : > { %v3224_v19 = vmax.f32 %v3222_v2, %v3223_v46  ;;  %v3236_v41 = vsel %vm700_vm2, %v3144_v5, -inf  ;;  %v3147_v30 = vmul.f32 %v3115_v35, %v5655_v0  ;;  %v3117_v10 = vmax.f32 %v3085_v28, 0.0 }
 0x33d   : > { %v3233_v62 = vmax.f32 %v3231_v54, %v3232_v33  ;;  %v3245_v59 = vmax.f32 %v3243_v14, %v3244_v32  ;;  %v3237_v43 = vrot.slane %v3236_v41, 4  ;;  %v3146_v34 = vmul.f32 %v3114_v9, %v5656_v15  ;;  %v2631_v51 = vpop.f32.mrf.mxu0 }
 0x33e   : > { %v3225_v60 = vrot.slane %v3224_v19, 2  ;;  %v3257_v25 = vsel %vm700_vm2, %v3147_v30, -inf  ;;  %v3149_v13 = vmul.f32 %v3117_v10, %v5657_v44  ;;  %v3084_v57 = vadd.f32 %v5171_v29, %v2621_v42  ;;  %v5658_v29 = vld [vmem:[#allocation26_spill] sm:$0xff] }
 0x33f   : > { %v3212_v16 = vmax.f32 %v3210_v61, %v3211_v11  ;;  %v3246_v2 = vrot.slane %v3245_v59, 2  ;;  %v3238_v46 = vmax.f32 %v3236_v41, %v3237_v43  ;;  %v3258_v5 = vrot.slane %v3257_v25, 4  ;;  %v3917_v21 = vpop.f32.mrf.mxu0 }
 0x340   : > { %v3226_v35 = vmax.f32 %v3224_v19, %v3225_v60  ;;  %v3250_v54 = vsel %vm700_vm2, %v3146_v34, -inf  ;;  %v3271_v28 = vsel %vm700_vm2, %v3149_v13, -inf  ;;  %v3116_v14 = vmax.f32 %v3084_v57, 0.0 }
 0x341   : > { %v3234_v33 = vrot.slane %v3233_v62, 1  ;;  %v3247_v32 = vmax.f32 %v3245_v59, %v3246_v2  ;;  %v3239_v9 = vrot.slane %v3238_v46, 2  ;;  %v3259_v0 = vmax.f32 %v3257_v25, %v3258_v5  ;;  %v2641_v30 = vpop.f32.mrf.mxu0 }
 0x342   : > { %v3227_v15 = vrot.slane %v3226_v35, 1  ;;  %v3251_v10 = vrot.slane %v3250_v54, 4  ;;  %v3272_v44 = vrot.slane %v3271_v28, 4  ;;  %v3148_v61 = vmul.f32 %v3116_v14, %v5658_v29 }
 0x343   : > { %v3248_v42 = vrot.slane %v3247_v32, 1  ;;  %v3240_v11 = vmax.f32 %v3238_v46, %v3239_v9  ;;  %v3260_v41 = vrot.slane %v3259_v0, 2  ;;  %v3087_v19 = vadd.f32 %v3914_v56, %v2981_v50  ;;  %v3920_v43 = vpop.f32.mrf.mxu0 }
 0x344   : > { %v3219_v34 = vmax.f32 %v5227_v24, %v3218_v8  ;;  %v3252_v60 = vmax.f32 %v3250_v54, %v3251_v10  ;;  %v3273_v59 = vmax.f32 %v3271_v28, %v3272_v44  ;;  %v3264_v25 = vsel %vm700_vm2, %v3148_v61, -inf  ;;  %v5659_v28 = vld [vmem:[#allocation10_spill] sm:$0xff] }
 0x345   : > { %v3228_v13 = vmax.f32 %v3226_v35, %v3227_v15  ;;  %v3241_v57 = vrot.slane %v3240_v11, 1  ;;  %v3261_v2 = vmax.f32 %v3259_v0, %v3260_v41  ;;  %v3265_v5 = vrot.slane %v3264_v25, 4  ;;  %v2651_v6 = vpop.f32.mrf.mxu0  ;;  %v5660_v44 = vld [vmem:[#allocation14_spill] sm:$0xff] }
 0x346   : > { %v3200_v46 = vmax.f32 %v5230_v53, %v3199_v23  ;;  %v3253_v14 = vrot.slane %v3252_v60, 2  ;;  %v3274_v9 = vrot.slane %v3273_v59, 2  ;;  %v3119_v3 = vmax.f32 %v3087_v19, 0.0  ;;  %v5661_v19 = vld [vmem:[#allocation23_spill] sm:$0xff] }
 0x347   : > { %v3213_v50 = vrot.slane %v3212_v16, 1  ;;  %v3235_v56 = vmax.f32 %v3233_v62, %v3234_v33  ;;  %v5283_v29 = vmax.f32 %v3247_v32, %v3248_v42  ;;  %v3086_v24 = vadd.f32 %v2977_v38, %v2631_v51  ;;  %v5288_v8 = vpop.f32.mrf.mxu0 }
 0x348   : > { %v3262_v35 = vrot.slane %v3261_v2, 1  ;;  %v3266_v54 = vmax.f32 %v3264_v25, %v3265_v5  ;;  %v3151_v0 = vmul.f32 %v3119_v3, %v5659_v28  ;;  %v3089_v15 = vadd.f32 %v3917_v21, %v5221_v48 }
 0x349   : > { %v5293_v53 = vsel %vm966_vm3, %v3235_v56, %v3228_v13  ;;  %v5295_v23 = vmax.f32 %v3240_v11, %v3241_v57  ;;  %v5297_v62 = vmax.f32 %v3252_v60, %v3253_v14  ;;  %v3118_v33 = vmax.f32 %v3086_v24, 0.0  ;;  %v2661_v48 = vpop.f32.mrf.mxu0 }
 0x34a   : > { %v5299_v32 = vmax.f32 %v3273_v59, %v3274_v9  ;;  %v3285_v52 = vsel %vm700_vm2, %v3151_v0, -inf  ;;  %v3121_v38 = vmax.f32 %v3089_v15, 0.0  ;;  %v3220_v51 = vrot.slane %v3219_v34, 1 }
 0x34b   : > { %v3286_v10 = vrot.slane %v3285_v52, 4  ;;  %v3150_v61 = vmul.f32 %v3118_v33, %v5660_v44  ;;  %v3214_v42 = vmax.f32 %v3212_v16, %v3213_v50  ;;  %v3423_v21 = vsel %vm968_vm4, %v5247_v31, %v5238_v26  ;;  %v3926_v50 = vpop.f32.mrf.mxu0 }
 0x34c   : > { %v5306_v11 = vmax.f32 %v3261_v2, %v3262_v35  ;;  %v3267_v41 = vrot.slane %v3266_v54, 2  ;;  %v3153_v60 = vmul.f32 %v3121_v38, %v5661_v19  ;;  %v3424_v59 = vsel %vm970_vm5, %v5244_v27, %v3423_v21  ;;  %v5662_v35 = vld [vmem:[#allocation19_spill] sm:$0xff] }
 0x34d   : > { %v3287_v25 = vmax.f32 %v3285_v52, %v3286_v10  ;;  %v3278_v13 = vsel %vm700_vm2, %v3150_v61, -inf  ;;  %v3221_v57 = vmax.f32 %v3219_v34, %v3220_v51  ;;  %v3425_v5 = vsel %vm972_vm6, %v3200_v46, %v3424_v59  ;;  %v5663_v52 = vld [vmem:[#allocation31_spill] sm:$0xff]  ;;  %v2671_v51 = vpop.f32.mrf.mxu0  ;;  %v5664_v61 = vld [vmem:[#allocation30_spill] sm:$0xff] }
 0x34e   : > { %v3279_v16 = vrot.slane %v3278_v13, 4  ;;  %v3299_v14 = vsel %vm700_vm2, %v3153_v60, -inf  ;;  %v3426_v26 = vsel %vm974_vm7, %v5260_v1, %v3425_v5  ;;  %v3088_v31 = vadd.f32 %v5208_v12, %v2641_v30 }
 0x34f   : > { %v3288_v2 = vrot.slane %v3287_v25, 2  ;;  %v3300_v9 = vrot.slane %v3299_v14, 4  ;;  %v3427_v3 = vsel %vm976_vm8, %v3214_v42, %v3426_v26  ;;  %v3091_v27 = vadd.f32 %v3920_v43, %v2997_v39 }
 0x350   : > { %v3280_v34 = vmax.f32 %v3278_v13, %v3279_v16  ;;  %v5322_v46 = vsel %vm978_vm9, %v3221_v57, %v3427_v3  ;;  %v3120_v56 = vmax.f32 %v3088_v31, 0.0  ;;  %v3090_v1 = vadd.f32 %v2993_v22, %v2651_v6 }
 0x351   : > { %v3255_v12 = vrot.slane %v5297_v62, 1  ;;  %v3301_v30 = vmax.f32 %v3299_v14, %v3300_v9  ;;  %3454 = vrot.lane.b32.xlu0 %v5322_v46, %s3961_s14  ;;  %v3123_v24 = vmax.f32 %v3091_v27, 0.0  ;;  %v2860_v39 = vcombine.high %v5218_v55, %v5218_v55  ;;  %v5343_v14 = vpop.f32.mrf.mxu0 }
 0x352   : > { %v3281_v43 = vrot.slane %v3280_v34, 2  ;;  %v3152_v28 = vmul.f32 %v3120_v56, %v5662_v35  ;;  %v3122_v0 = vmax.f32 %v3090_v1, 0.0  ;;  %v2858_v15 = vcombine.high %v5197_v63, %v5197_v63 }
 0x353   : > { %v3268_v33 = vmax.f32 %v3266_v54, %v3267_v41  ;;  %v3289_v6 = vmax.f32 %v3287_v25, %v3288_v2  ;;  %v3302_v22 = vrot.slane %v3301_v30, 2  ;;  %v3155_v38 = vmul.f32 %v3123_v24, %v5663_v52  ;;  %v5665_v24 = vld [vmem:[#allocation33_spill] sm:$0xff] }
 0x354   : > { %v3282_v10 = vmax.f32 %v3280_v34, %v3281_v43  ;;  %v3292_v44 = vsel %vm700_vm2, %v3152_v28, -inf  ;;  %v3154_v42 = vmul.f32 %v3122_v0, %v5664_v61  ;;  %v3005_v55 = vrot.slane %v2860_v39, %v4612_v40 }
 0x355   : > { %v3303_v21 = vmax.f32 %v3301_v30, %v3302_v22  ;;  %v3293_v19 = vrot.slane %v3292_v44, 4  ;;  %v3313_v60 = vsel %vm700_vm2, %v3155_v38, -inf  ;;  %v3001_v59 = vrot.slane %v2858_v15, %v4612_v40  ;;  %v2681_v22 = vpop.f32.mrf.mxu0 }
 0x356   : > { %v3283_v63 = vrot.slane %v3282_v10, 1  ;;  %v3314_v54 = vrot.slane %v3313_v60, 4  ;;  %v3306_v41 = vsel %vm700_vm2, %v3154_v42, -inf  ;;  %v3093_v25 = vadd.f32 %v5288_v8, %v3005_v55 }
 0x357   : > { %v3269_v13 = vrot.slane %v3268_v33, 1  ;;  %v3294_v57 = vmax.f32 %v3292_v44, %v3293_v19  ;;  %v3307_v5 = vrot.slane %v3306_v41, 4  ;;  %v3092_v16 = vadd.f32 %v3001_v59, %v2661_v48  ;;  %v5666_v48 = vld [vmem:[#allocation32_spill] sm:$0xff]  ;;  %v5668_v59 = vld [vmem:[#allocation22_spill] sm:$0xff] }
 0x358   : > { %v3290_v26 = vrot.slane %v3289_v6, 1  ;;  %v3315_v31 = vmax.f32 %v3313_v60, %v3314_v54  ;;  %v3125_v2 = vmax.f32 %v3093_v25, 0.0  ;;  %v3013_v9 = vrot.slane %v5177_v20, %v4612_v40 }
 0x359   : > { %v3304_v3 = vrot.slane %v3303_v21, 1  ;;  %v3295_v27 = vrot.slane %v3294_v57, 2  ;;  %v3308_v34 = vmax.f32 %v3306_v41, %v3307_v5  ;;  %v3124_v56 = vmax.f32 %v3092_v16, 0.0 }
 0x35a   : > { %v3284_v1 = vmax.f32 %v3282_v10, %v3283_v63  ;;  %v3316_v30 = vrot.slane %v3315_v31, 2  ;;  %v3157_v8 = vmul.f32 %v3125_v2, %v5665_v24  ;;  %v3095_v39 = vadd.f32 %v3926_v50, %v3013_v9 }
 0x35b   : > { %v3296_v43 = vmax.f32 %v3294_v57, %v3295_v27  ;;  %v3309_v35 = vrot.slane %v3308_v34, 2  ;;  %v3156_v28 = vmul.f32 %v3124_v56, %v5666_v48  ;;  %v5667_v0 = vrot.slane %v5158_v47, %v4612_v40  ;;  %v3932_v57 = vpop.f32.mrf.mxu0 }
 0x35c   : > { %v3291_v52 = vmax.f32 %v3289_v6, %v3290_v26  ;;  %v3317_v38 = vmax.f32 %v3315_v31, %v3316_v30  ;;  %v3327_v44 = vsel %vm700_vm2, %v3157_v8, -inf  ;;  %v3127_v61 = vmax.f32 %v3095_v39, 0.0 }
 0x35d   : > { %v3094_v15 = vadd.f32 %v5667_v0, %v2671_v51  ;;  %v3297_v42 = vrot.slane %v3296_v43, 1  ;;  %v3310_v10 = vmax.f32 %v3308_v34, %v3309_v35  ;;  %v3328_v55 = vrot.slane %v3327_v44, 4 }
 0x35e   : > { %v3320_v19 = vsel %vm700_vm2, %v3156_v28, -inf  ;;  %v3256_v50 = vmax.f32 %v5297_v62, %v3255_v12  ;;  %v3159_v63 = vmul.f32 %v3127_v61, %v5668_v59  ;;  %v5357_v41 = vsel %vm966_vm3, %v3291_v52, %v3284_v1  ;;  %v2691_v1 = vpop.f32.mrf.mxu0 }
 0x35f   : > { %v3321_v60 = vrot.slane %v3320_v19, 4  ;;  %v3126_v54 = vmax.f32 %v3094_v15, 0.0  ;;  %v5359_v51 = vmax.f32 %v3303_v21, %v3304_v3  ;;  %v3270_v6 = vmax.f32 %v3268_v33, %v3269_v13 }
 0x360   : > { %v3276_v25 = vrot.slane %v5299_v32, 1  ;;  %v3318_v5 = vrot.slane %v3317_v38, 1  ;;  %v3341_v26 = vsel %vm700_vm2, %v3159_v63, -inf  ;;  %v5364_v62 = vmax.f32 %v3296_v43, %v3297_v42 }
 0x361   : > { %v3322_v16 = vmax.f32 %v3320_v19, %v3321_v60  ;;  %v3158_v31 = vmul.f32 %v3126_v54, %v4668_v18  ;;  %v3311_v12 = vrot.slane %v3310_v10, 1  ;;  %v3329_v2 = vmax.f32 %v3327_v44, %v3328_v55  ;;  %v3935_v44 = vpop.f32.mrf.mxu0 }
 0x362   : > { %v3342_v9 = vrot.slane %v3341_v26, 4  ;;  %v3430_v33 = vsel %vm968_vm4, %v5295_v23, %v5293_v53  ;;  %v2908_v21 = vcombine.high %v5177_v20, %v5177_v20  ;;  %v3277_v56 = vmax.f32 %v5299_v32, %v3276_v25 }
 0x363   : > { %v3323_v27 = vrot.slane %v3322_v16, 2  ;;  %v3334_v34 = vsel %vm700_vm2, %v3158_v31, -inf  ;;  %v3431_v18 = vsel %vm970_vm5, %v5283_v29, %v3430_v33  ;;  %v5669_v53 = vcombine.high %v5158_v47, %v5158_v47 }
 0x364   : > { %v3343_v13 = vmax.f32 %v3341_v26, %v3342_v9  ;;  %v3335_v3 = vrot.slane %v3334_v34, 4  ;;  %v3432_v24 = vsel %vm972_vm6, %v3256_v50, %v3431_v18  ;;  %v3021_v8 = vrot.slane %v2908_v21, %v4612_v40 }
 0x365   : > { %v3324_v30 = vmax.f32 %v3322_v16, %v3323_v27  ;;  %v3017_v23 = vrot.slane %v5669_v53, %v4612_v40  ;;  %v3433_v43 = vsel %vm974_vm7, %v5306_v11, %v3432_v24  ;;  %v2877_v32 = vcombine.high %v5174_v36, %v5174_v36 }
 0x366   : > { %v3344_v39 = vrot.slane %v3343_v13, 2  ;;  %v3336_v20 = vmax.f32 %v3334_v34, %v3335_v3  ;;  %v5385_v29 = vmax.f32 %v3317_v38, %v3318_v5  ;;  %v3434_v35 = vsel %vm976_vm8, %v3270_v6, %v3433_v43  ;;  %v2701_v5 = vpop.f32.mrf.mxu0 }
 0x367   : > { %v3097_v48 = vadd.f32 %v5343_v14, %v3021_v8  ;;  %v3096_v28 = vadd.f32 %v3017_v23, %v2681_v22  ;;  %v3330_v0 = vrot.slane %v3329_v2, 2  ;;  %v5390_v47 = vsel %vm978_vm9, %v3277_v56, %v3434_v35 }
 0x368   : > { %v3337_v15 = vrot.slane %v3336_v20, 2  ;;  %v2905_v52 = vrot.slane %v2877_v32, %v4602_v58  ;;  %v3312_v61 = vmax.f32 %v3310_v10, %v3311_v12  ;;  %3456 = vrot.lane.b32.xlu1 %v5390_v47, %s3961_s14  ;;  %v2891_v42 = vrot.slane %v5174_v36, %v4602_v58 }
 0x369   : > { %v3129_v11 = vmax.f32 %v3097_v48, 0.0  ;;  %v3128_v38 = vmax.f32 %v3096_v28, 0.0  ;;  %v3325_v55 = vrot.slane %v3324_v30, 1  ;;  %v3345_v14 = vmax.f32 %v3343_v13, %v3344_v39 }
 0x36a   : > { %v3029_v22 = vrot.slane %v2905_v52, %v4612_v40  ;;  %v2909_v19 = vcombine.high %v2905_v52, %v2905_v52  ;;  %v3025_v59 = vrot.slane %v2891_v42, %v4612_v40  ;;  %v2907_v10 = vcombine.high %v2891_v42, %v2891_v42 }
 0x36b   : > { %v3161_v50 = vmul.f32 %v3129_v11, %v4943_v17  ;;  %v3160_v60 = vmul.f32 %v3128_v38, %v4823_v49  ;;  %v3331_v63 = vmax.f32 %v3329_v2, %v3330_v0  ;;  %v3338_v54 = vmax.f32 %v3336_v20, %v3337_v15 }
 0x36c   : > { %v3099_v6 = vadd.f32 %v3932_v57, %v3029_v22  ;;  %v3037_v25 = vrot.slane %v2909_v19, %v4612_v40  ;;  %v3098_v16 = vadd.f32 %v3025_v59, %v2691_v1  ;;  %v3033_v26 = vrot.slane %v2907_v10, %v4612_v40 }
 0x36d   : > { %v3355_v58 = vsel %vm700_vm2, %v3161_v50, -inf  ;;  %v3348_v36 = vsel %vm700_vm2, %v3160_v60, -inf  ;;  %v3326_v49 = vmax.f32 %v3324_v30, %v3325_v55  ;;  %v3346_v9 = vrot.slane %v3345_v14, 1 }
 0x36e   : > { %v3356_v31 = vrot.slane %v3355_v58, 4  ;;  %v3349_v17 = vrot.slane %v3348_v36, 4  ;;  %v3131_v12 = vmax.f32 %v3099_v6, 0.0  ;;  %v3130_v27 = vmax.f32 %v3098_v16, 0.0 }
 0x36f   : > { %v3101_v34 = vadd.f32 %v3935_v44, %v3037_v25  ;;  %v3100_v2 = vadd.f32 %v3033_v26, %v2701_v5  ;;  %v3339_v33 = vrot.slane %v3338_v54, 1  ;;  %v3332_v1 = vrot.slane %v3331_v63, 1 }
 0x370   : > { %v3357_v57 = vmax.f32 %v3355_v58, %v3356_v31  ;;  %v3350_v21 = vmax.f32 %v3348_v36, %v3349_v17  ;;  %v3163_v13 = vmul.f32 %v3131_v12, %v4983_v45  ;;  %v3162_v3 = vmul.f32 %v3130_v27, %v4963_v4 }
 0x371   : > { %v3133_v56 = vmax.f32 %v3101_v34, 0.0  ;;  %v3132_v18 = vmax.f32 %v3100_v2, 0.0  ;;  %v3437_v30 = vsel %vm968_vm4, %v5364_v62, %v5357_v41  ;;  %v3347_v62 = vmax.f32 %v3345_v14, %v3346_v9 }
 0x372   : > { %v3358_v24 = vrot.slane %v3357_v57, 2  ;;  %v3351_v40 = vrot.slane %v3350_v21, 2  ;;  %v3369_v8 = vsel %vm700_vm2, %v3163_v13, -inf  ;;  %v3362_v23 = vsel %vm700_vm2, %v3162_v3, -inf }
 0x373   : > { %v3370_v53 = vrot.slane %v3369_v8, 4  ;;  %v3165_v39 = vmul.f32 %v3133_v56, %v5007_v37  ;;  %v3164_v45 = vmul.f32 %v3132_v18, %v5004_v7  ;;  %v3363_v43 = vrot.slane %v3362_v23, 4 }
 0x374   : > { %v3359_v20 = vmax.f32 %v3357_v57, %v3358_v24  ;;  %v3352_v4 = vmax.f32 %v3350_v21, %v3351_v40  ;;  %v3438_v32 = vsel %vm970_vm5, %v5359_v51, %v3437_v30  ;;  %v3340_v37 = vmax.f32 %v3338_v54, %v3339_v33 }
 0x375   : > { %v3371_v35 = vmax.f32 %v3369_v8, %v3370_v53  ;;  %v3383_v48 = vsel %vm700_vm2, %v3165_v39, -inf  ;;  %v3376_v28 = vsel %vm700_vm2, %v3164_v45, -inf  ;;  %v3439_v41 = vsel %vm972_vm6, %v3312_v61, %v3438_v32 }
 0x376   : > { %v3353_v0 = vrot.slane %v3352_v4, 1  ;;  %v3364_v15 = vmax.f32 %v3362_v23, %v3363_v43  ;;  %v3384_v52 = vrot.slane %v3383_v48, 4  ;;  %v3377_v7 = vrot.slane %v3376_v28, 4 }
 0x377   : > { %v3372_v44 = vrot.slane %v3371_v35, 2  ;;  %v3333_v11 = vmax.f32 %v3331_v63, %v3332_v1  ;;  %v3440_v51 = vsel %vm974_vm7, %v5385_v29, %v3439_v41  ;;  %v3360_v22 = vrot.slane %v3359_v20, 1 }
 0x378   : > { %v3354_v38 = vmax.f32 %v3352_v4, %v3353_v0  ;;  %v3365_v42 = vrot.slane %v3364_v15, 2  ;;  %v3385_v55 = vmax.f32 %v3383_v48, %v3384_v52  ;;  %v3378_v50 = vmax.f32 %v3376_v28, %v3377_v7 }
 0x379   : > { %v3373_v19 = vmax.f32 %v3371_v35, %v3372_v44  ;;  %v3441_v60 = vsel %vm976_vm8, %v3326_v49, %v3440_v51  ;;  %v3443_v10 = vsel %vm966_vm3, %v3347_v62, %v3340_v37  ;;  %v3361_v5 = vmax.f32 %v3359_v20, %v3360_v22 }
 0x37a   : > { %v3366_v61 = vmax.f32 %v3364_v15, %v3365_v42  ;;  %v3386_v14 = vrot.slane %v3385_v55, 2  ;;  %v3442_v59 = vsel %vm978_vm9, %v3333_v11, %v3441_v60  ;;  %v3379_v54 = vrot.slane %v3378_v50, 2 }
 0x37b   : > { %3458 = vrot.lane.b32.xlu0 %v3442_v59, %s3961_s14  ;;  %v3374_v63 = vrot.slane %v3373_v19, 1  ;;  %v3444_v29 = vsel %vm968_vm4, %v3354_v38, %v3443_v10 }
 0x37c   : > { %v3367_v6 = vrot.slane %v3366_v61, 1  ;;  %v3387_v25 = vmax.f32 %v3385_v55, %v3386_v14  ;;  %v3380_v58 = vmax.f32 %v3378_v50, %v3379_v54  ;;  %v3445_v31 = vsel %vm970_vm5, %v3361_v5, %v3444_v29 }
 0x37d   : > { %v3375_v17 = vmax.f32 %v3373_v19, %v3374_v63 }
 0x37e   : > { %v3368_v36 = vmax.f32 %v3366_v61, %v3367_v6  ;;  %v3388_v16 = vrot.slane %v3387_v25, 1  ;;  %v3381_v26 = vrot.slane %v3380_v58, 1 }
 0x380   : > { %v3446_v12 = vsel %vm972_vm6, %v3368_v36, %v3445_v31  ;;  %v3382_v49 = vmax.f32 %v3380_v58, %v3381_v26  ;;  %v3389_v9 = vmax.f32 %v3387_v25, %v3388_v16 }
 0x381   : > { %v3447_v27 = vsel %vm974_vm7, %v3375_v17, %v3446_v12 }
 0x382   : > { %v3448_v34 = vsel %vm976_vm8, %v3382_v49, %v3447_v27 }
 0x383   : > { %v3449_v2 = vsel %vm978_vm9, %v3389_v9, %v3448_v34 }
 0x384   : > { %3460 = vrot.lane.b32.xlu1 %v3449_v2, %s3961_s14 }
 0x3c3   : > { %v3455_v33 = vpop.permute.xlu0 %3454 }
 0x3c4   : > { %v3466_v57 = vsel %vm700_vm2, %v5322_v46, %v3455_v33 }
 0x3c5   : > { %3471 = vst.msk [vmem:[%s307_s19] sm:$0xff] %vm3470_vm10, %v3466_v57 }
 0x3da   : > { %v3457_v21 = vpop.permute.xlu1 %3456 }
 0x3db   : > { %v3467_v13 = vsel %vm700_vm2, %v5390_v47, %v3457_v21 }
 0x3dc   : > { %3472 = vst.msk [vmem:[%s307_s19 + $0x8] sm:$0xff] %vm3470_vm10, %v3467_v13 }
 0x3ed   : > { %v3459_v3 = vpop.permute.xlu0 %3458 }
 0x3ee   : > { %v3468_v56 = vsel %vm700_vm2, %v3442_v59, %v3459_v3 }
 0x3ef   : > { %3473 = vst.msk [vmem:[%s307_s19 + $0x10] sm:$0xff] %vm3470_vm10, %v3468_v56 }
 0x3f6   : > { %v3461_v18 = vpop.permute.xlu1 %3460 }
 0x3f7   : > { %v3469_v1 = vsel %vm700_vm2, %v3449_v2, %v3461_v18 }
 0x3f8   : > { %3474 = vst.msk [vmem:[%s307_s19 + $0x18] sm:$0xff] %vm3470_vm10, %v3469_v1 }
 0x3f9 PF: > { %s18_s27 = sadd.s32 1, %s3957_s27  }
 0x3fa   : > { %p15_p5 = scmp.ge.s32.totalorder %s18_s27, 4  }
 0x3fc   :  { %17 = sbr.rel (!%p15_p5) target bundleno = 1 (0x1), region = 82 }

</bundles_post_ra>
